<compile_context>
chip_gen: v7x
topology: tpu7x:2x2x1
jax: 0.10.0
libtpu: 0.0.40
codegen_flags: <defaults>
</compile_context>

<pallas_src>
import functools

import jax
import jax.numpy as jnp
from jax.experimental import pallas as pl
from jax.experimental.pallas import tpu as pltpu


_KTAPS = {0: (1, 3), 1: (0, 2)}   # parity -> ConvTranspose kernel tap indices
_OFFS = {0: (1, 0), 1: (2, 1)}    # parity -> offsets into the zero-padded window


def _transition_up_kernel(xw_ref, halo_ref, w_ref, b_ref, out_ref, *,
                          tile_h, W, Cin, Cout):
    # xw_ref  : (1, tile_h, W+2, Cin)  rows [t*tile_h, (t+1)*tile_h), W zero-padded
    # halo_ref: (1, 1, 2, W+2, Cin)    row above / row below the tile (zeros at borders)
    # w_ref   : (4, 4*Cin, Cout)       per-parity folded weights, parity order (ph, pw)
    # b_ref   : (1, 4*Cout)            bias tiled over the 4 parities (f32)
    # out_ref : (1, tile_h, W, 4*Cout)
    halo = halo_ref[0, 0]                                       # (2, W+2, Cin)
    xpad = jnp.concatenate([halo[0:1], xw_ref[0], halo[1:2]],
                           axis=0)                              # (tile_h+2, W+2, Cin)

    rows = tile_h * W
    outs = []
    for ph in (0, 1):
        for pw in (0, 1):
            p = 2 * ph + pw
            taps = [xpad[dh:dh + tile_h, dw:dw + W, :]
                    for dh in _OFFS[ph] for dw in _OFFS[pw]]    # 4 x (tile_h, W, Cin)
            xcat = jnp.concatenate(taps, axis=-1).reshape(rows, 4 * Cin)
            outs.append(jnp.dot(xcat, w_ref[p],
                                preferred_element_type=jnp.float32))
    res = jnp.concatenate(outs, axis=-1) + b_ref[...]           # (rows, 4*Cout) f32
    out_ref[...] = res.reshape(1, tile_h, W, 4 * Cout).astype(out_ref.dtype)


def _pick_tile_h(H, W, target_rows=2048):
    """Largest divisor of H with ~<=2048 matmul rows per step and >=2 tiles."""
    divs = [d for d in range(1, H + 1) if H % d == 0]
    good = [d for d in divs if d * W <= target_rows and H // d >= 2]
    if good:
        return max(good)
    small = [d for d in divs if d * W <= target_rows]
    return max(small) if small else 1


def transition_up(x_nchw, weight, bias):
    """Pallas ConvTranspose2d(k=4, stride=2, pad=1), PyTorch semantics.

    x_nchw: (N, Cin, H, W); weight: (Cin, Cout, 4, 4) (PyTorch layout); bias: (Cout,)
    returns: (N, Cout, 2H, 2W) in x_nchw.dtype
    """
    N, Cin, H, W = x_nchw.shape
    Cout = weight.shape[1]
    dt = x_nchw.dtype

    tile_h = _pick_tile_h(H, W)
    num_t = H // tile_h

    # channels-last, zero-padded along W only (single pass; no 9x windows)
    x = jnp.transpose(x_nchw, (0, 2, 3, 1))                      # (N, H, W, Cin)
    xw = jnp.pad(x, ((0, 0), (0, 0), (1, 1), (0, 0)))            # (N, H, W+2, Cin)

    # 2-row halo per H tile: the row above and the row below the tile
    zrow = jnp.zeros((N, 1, W + 2, Cin), dt)
    top = jnp.concatenate([zrow, xw[:, tile_h - 1:H - 1:tile_h]], axis=1)  # (N, num_t, W+2, Cin)
    bot = jnp.concatenate([xw[:, tile_h:H:tile_h], zrow], axis=1)          # (N, num_t, W+2, Cin)
    halo = jnp.stack([top, bot], axis=2)                                   # (N, num_t, 2, W+2, Cin)

    # fold the 4 taps of each parity into a single (4*Cin, Cout) weight block
    w = weight.astype(dt)
    w_par = jnp.stack(
        [jnp.concatenate([w[:, :, kh, kw] for kh in _KTAPS[ph] for kw in _KTAPS[pw]],
                         axis=0)
         for ph in (0, 1) for pw in (0, 1)], axis=0)             # (4, 4*Cin, Cout)
    b4 = jnp.tile(bias.astype(jnp.float32), 4).reshape(1, 4 * Cout)

    kernel = functools.partial(_transition_up_kernel,
                               tile_h=tile_h, W=W, Cin=Cin, Cout=Cout)

    out = pl.pallas_call(
        kernel,
        out_shape=jax.ShapeDtypeStruct((N, H, W, 4 * Cout), dt),
        grid=(N, num_t),
        in_specs=[
            pl.BlockSpec((1, tile_h, W + 2, Cin), lambda n, t: (n, t, 0, 0)),
            pl.BlockSpec((1, 1, 2, W + 2, Cin), lambda n, t: (n, t, 0, 0, 0)),
            pl.BlockSpec((4, 4 * Cin, Cout), lambda n, t: (0, 0, 0)),
            pl.BlockSpec((1, 4 * Cout), lambda n, t: (0, 0)),
        ],
        out_specs=pl.BlockSpec((1, tile_h, W, 4 * Cout), lambda n, t: (n, t, 0, 0)),
        compiler_params=pltpu.CompilerParams(
            dimension_semantics=("parallel", "parallel"),
            vmem_limit_bytes=48 * 1024 * 1024),
    )(xw, halo, w_par, b4)

    # de-interleave parities + go back to NCHW in one fused transpose:
    # y[n, c, 2a+ph, 2b+pw] = out[n, a, b, ph, pw, c]
    # TODO(synk): if the surrounding model were NHWC, this pass could be dropped.
    out = out.reshape(N, H, W, 2, 2, Cout)
    return jnp.transpose(out, (0, 5, 1, 3, 2, 4)).reshape(N, Cout, 2 * H, 2 * W)


def transition_up_ref(x_nchw, weight, bias):
    """Pure-JAX reference: ConvTranspose2d == lhs-dilated conv with flipped kernel."""
    w_flip = weight[:, :, ::-1, ::-1]
    w_oihw = jnp.transpose(w_flip, (1, 0, 2, 3))                 # (Cout, Cin, 4, 4)
    y = jax.lax.conv_general_dilated(
        x_nchw.astype(jnp.float32), w_oihw.astype(jnp.float32),
        window_strides=(1, 1), padding=((2, 2), (2, 2)),
        lhs_dilation=(2, 2), rhs_dilation=(1, 1),
        dimension_numbers=("NCHW", "OIHW", "NCHW"))
    return y + bias.reshape(1, -1, 1, 1)


if __name__ == "__main__":
    N, Cin, Cout, H, W = 2, 8, 4, 16, 16

    key = jax.random.PRNGKey(0)
    k1, k2, k3 = jax.random.split(key, 3)
    x = jax.random.normal(k1, (N, Cin, H, W), jnp.float32)
    # PyTorch ConvTranspose2d weight layout: (in_channels, out_channels, kH, kW)
    weight = jax.random.normal(k2, (Cin, Cout, 4, 4), jnp.float32) * 0.1
    bias = jax.random.normal(k3, (Cout,), jnp.float32) * 0.1

    y = jax.block_until_ready(transition_up(x, weight, bias))
    assert y.shape == (N, Cout, 2 * H, 2 * W), y.shape

    y_ref = jax.block_until_ready(transition_up_ref(x, weight, bias))
    if not bool(jnp.allclose(y, y_ref, atol=1e-4, rtol=1e-4)):
        raise AssertionError("Pallas TransitionUp does not match reference")

    print("KERNEL_OK")
</pallas_src>

<mosaic_0001>
module attributes {stable_mosaic.version = 11 : i64} {
  func.func @_transition_up_kernel(%arg0: i32, %arg1: i32, %arg2: memref<1x8x18x8xf32, #tpu.memory_space<vmem>>, %arg3: memref<1x1x2x18x8xf32, #tpu.memory_space<vmem>>, %arg4: memref<4x32x4xf32, #tpu.memory_space<vmem>>, %arg5: memref<1x16xf32, #tpu.memory_space<vmem>>, %arg6: memref<1x8x16x16xf32, #tpu.memory_space<vmem>>) attributes {dimension_semantics = [#tpu.dimension_semantics<parallel>, #tpu.dimension_semantics<parallel>], iteration_bounds = array<i64: 2, 2>, scalar_prefetch = 0 : i64, scratch_operands = 0 : i64, tpu.core_type = #tpu.core_type<tc>, window_params = [{transform_indices = @transform_0, window_bounds = array<i64: 1, 8, 18, 8>}, {transform_indices = @transform_1, window_bounds = array<i64: 1, 1, 2, 18, 8>}, {pipeline_mode = #tpu.pipeline_mode<synchronous>, transform_indices = @transform_2, window_bounds = array<i64: 4, 32, 4>}, {pipeline_mode = #tpu.pipeline_mode<synchronous>, transform_indices = @transform_3, window_bounds = array<i64: 1, 16>}, {transform_indices = @transform_4, window_bounds = array<i64: 1, 8, 16, 16>}]} {
    %c0 = arith.constant 0 : index
    %c0_0 = arith.constant 0 : index
    %c0_1 = arith.constant 0 : index
    %c0_2 = arith.constant 0 : index
    %c0_3 = arith.constant 0 : index
    %0 = vector.load %arg3[%c0, %c0_0, %c0_1, %c0_2, %c0_3] : memref<1x1x2x18x8xf32, #tpu.memory_space<vmem>>, vector<1x1x2x18x8xf32>
    %1 = vector.shape_cast %0 : vector<1x1x2x18x8xf32> to vector<2x18x8xf32>
    %2 = vector.extract_strided_slice %1 {offsets = [0, 0, 0], sizes = [1, 18, 8], strides = [1, 1, 1]} : vector<2x18x8xf32> to vector<1x18x8xf32>
    %c0_4 = arith.constant 0 : index
    %c0_5 = arith.constant 0 : index
    %c0_6 = arith.constant 0 : index
    %c0_7 = arith.constant 0 : index
    %3 = vector.load %arg2[%c0_4, %c0_5, %c0_6, %c0_7] : memref<1x8x18x8xf32, #tpu.memory_space<vmem>>, vector<1x8x18x8xf32>
    %4 = vector.shape_cast %3 : vector<1x8x18x8xf32> to vector<8x18x8xf32>
    %5 = vector.extract_strided_slice %1 {offsets = [1, 0, 0], sizes = [1, 18, 8], strides = [1, 1, 1]} : vector<2x18x8xf32> to vector<1x18x8xf32>
    %6 = tpu.concatenate %2, %4, %5 in 0 : vector<1x18x8xf32>, vector<8x18x8xf32>, vector<1x18x8xf32> -> vector<10x18x8xf32>
    %7 = vector.extract_strided_slice %6 {offsets = [1, 1, 0], sizes = [8, 16, 8], strides = [1, 1, 1]} : vector<10x18x8xf32> to vector<8x16x8xf32>
    %8 = vector.extract_strided_slice %6 {offsets = [1, 0, 0], sizes = [8, 16, 8], strides = [1, 1, 1]} : vector<10x18x8xf32> to vector<8x16x8xf32>
    %9 = vector.extract_strided_slice %6 {offsets = [0, 1, 0], sizes = [8, 16, 8], strides = [1, 1, 1]} : vector<10x18x8xf32> to vector<8x16x8xf32>
    %10 = vector.extract_strided_slice %6 {offsets = [0, 0, 0], sizes = [8, 16, 8], strides = [1, 1, 1]} : vector<10x18x8xf32> to vector<8x16x8xf32>
    %11 = tpu.concatenate %7, %8, %9, %10 in 2 : vector<8x16x8xf32>, vector<8x16x8xf32>, vector<8x16x8xf32>, vector<8x16x8xf32> -> vector<8x16x32xf32>
    %12 = vector.shape_cast %11 : vector<8x16x32xf32> to vector<128x32xf32>
    %c0_8 = arith.constant 0 : index
    %c0_9 = arith.constant 0 : index
    %c0_10 = arith.constant 0 : index
    %13 = vector.load %arg4[%c0_8, %c0_9, %c0_10] : memref<4x32x4xf32, #tpu.memory_space<vmem>>, vector<1x32x4xf32>
    %14 = vector.shape_cast %13 : vector<1x32x4xf32> to vector<32x4xf32>
    %cst = arith.constant dense<0.000000e+00> : vector<128x4xf32>
    %15 = tpu.matmul %12, %14, %cst {dimension_numbers = #tpu.dot_dimension_numbers<[1], [0], [0], [1], [0, 0, 1, 1], [], []>} : vector<128x32xf32>, vector<32x4xf32>, vector<128x4xf32> -> vector<128x4xf32>
    %16 = vector.extract_strided_slice %6 {offsets = [1, 2, 0], sizes = [8, 16, 8], strides = [1, 1, 1]} : vector<10x18x8xf32> to vector<8x16x8xf32>
    %17 = vector.extract_strided_slice %6 {offsets = [1, 1, 0], sizes = [8, 16, 8], strides = [1, 1, 1]} : vector<10x18x8xf32> to vector<8x16x8xf32>
    %18 = vector.extract_strided_slice %6 {offsets = [0, 2, 0], sizes = [8, 16, 8], strides = [1, 1, 1]} : vector<10x18x8xf32> to vector<8x16x8xf32>
    %19 = vector.extract_strided_slice %6 {offsets = [0, 1, 0], sizes = [8, 16, 8], strides = [1, 1, 1]} : vector<10x18x8xf32> to vector<8x16x8xf32>
    %20 = tpu.concatenate %16, %17, %18, %19 in 2 : vector<8x16x8xf32>, vector<8x16x8xf32>, vector<8x16x8xf32>, vector<8x16x8xf32> -> vector<8x16x32xf32>
    %21 = vector.shape_cast %20 : vector<8x16x32xf32> to vector<128x32xf32>
    %c1 = arith.constant 1 : index
    %c0_11 = arith.constant 0 : index
    %c0_12 = arith.constant 0 : index
    %22 = vector.load %arg4[%c1, %c0_11, %c0_12] : memref<4x32x4xf32, #tpu.memory_space<vmem>>, vector<1x32x4xf32>
    %23 = vector.shape_cast %22 : vector<1x32x4xf32> to vector<32x4xf32>
    %cst_13 = arith.constant dense<0.000000e+00> : vector<128x4xf32>
    %24 = tpu.matmul %21, %23, %cst_13 {dimension_numbers = #tpu.dot_dimension_numbers<[1], [0], [0], [1], [0, 0, 1, 1], [], []>} : vector<128x32xf32>, vector<32x4xf32>, vector<128x4xf32> -> vector<128x4xf32>
    %25 = vector.extract_strided_slice %6 {offsets = [2, 1, 0], sizes = [8, 16, 8], strides = [1, 1, 1]} : vector<10x18x8xf32> to vector<8x16x8xf32>
    %26 = vector.extract_strided_slice %6 {offsets = [2, 0, 0], sizes = [8, 16, 8], strides = [1, 1, 1]} : vector<10x18x8xf32> to vector<8x16x8xf32>
    %27 = vector.extract_strided_slice %6 {offsets = [1, 1, 0], sizes = [8, 16, 8], strides = [1, 1, 1]} : vector<10x18x8xf32> to vector<8x16x8xf32>
    %28 = vector.extract_strided_slice %6 {offsets = [1, 0, 0], sizes = [8, 16, 8], strides = [1, 1, 1]} : vector<10x18x8xf32> to vector<8x16x8xf32>
    %29 = tpu.concatenate %25, %26, %27, %28 in 2 : vector<8x16x8xf32>, vector<8x16x8xf32>, vector<8x16x8xf32>, vector<8x16x8xf32> -> vector<8x16x32xf32>
    %30 = vector.shape_cast %29 : vector<8x16x32xf32> to vector<128x32xf32>
    %c2 = arith.constant 2 : index
    %c0_14 = arith.constant 0 : index
    %c0_15 = arith.constant 0 : index
    %31 = vector.load %arg4[%c2, %c0_14, %c0_15] : memref<4x32x4xf32, #tpu.memory_space<vmem>>, vector<1x32x4xf32>
    %32 = vector.shape_cast %31 : vector<1x32x4xf32> to vector<32x4xf32>
    %cst_16 = arith.constant dense<0.000000e+00> : vector<128x4xf32>
    %33 = tpu.matmul %30, %32, %cst_16 {dimension_numbers = #tpu.dot_dimension_numbers<[1], [0], [0], [1], [0, 0, 1, 1], [], []>} : vector<128x32xf32>, vector<32x4xf32>, vector<128x4xf32> -> vector<128x4xf32>
    %34 = vector.extract_strided_slice %6 {offsets = [2, 2, 0], sizes = [8, 16, 8], strides = [1, 1, 1]} : vector<10x18x8xf32> to vector<8x16x8xf32>
    %35 = vector.extract_strided_slice %6 {offsets = [2, 1, 0], sizes = [8, 16, 8], strides = [1, 1, 1]} : vector<10x18x8xf32> to vector<8x16x8xf32>
    %36 = vector.extract_strided_slice %6 {offsets = [1, 2, 0], sizes = [8, 16, 8], strides = [1, 1, 1]} : vector<10x18x8xf32> to vector<8x16x8xf32>
    %37 = vector.extract_strided_slice %6 {offsets = [1, 1, 0], sizes = [8, 16, 8], strides = [1, 1, 1]} : vector<10x18x8xf32> to vector<8x16x8xf32>
    %38 = tpu.concatenate %34, %35, %36, %37 in 2 : vector<8x16x8xf32>, vector<8x16x8xf32>, vector<8x16x8xf32>, vector<8x16x8xf32> -> vector<8x16x32xf32>
    %39 = vector.shape_cast %38 : vector<8x16x32xf32> to vector<128x32xf32>
    %c3 = arith.constant 3 : index
    %c0_17 = arith.constant 0 : index
    %c0_18 = arith.constant 0 : index
    %40 = vector.load %arg4[%c3, %c0_17, %c0_18] : memref<4x32x4xf32, #tpu.memory_space<vmem>>, vector<1x32x4xf32>
    %41 = vector.shape_cast %40 : vector<1x32x4xf32> to vector<32x4xf32>
    %cst_19 = arith.constant dense<0.000000e+00> : vector<128x4xf32>
    %42 = tpu.matmul %39, %41, %cst_19 {dimension_numbers = #tpu.dot_dimension_numbers<[1], [0], [0], [1], [0, 0, 1, 1], [], []>} : vector<128x32xf32>, vector<32x4xf32>, vector<128x4xf32> -> vector<128x4xf32>
    %43 = tpu.concatenate %15, %24, %33, %42 in 1 : vector<128x4xf32>, vector<128x4xf32>, vector<128x4xf32>, vector<128x4xf32> -> vector<128x16xf32>
    %c0_20 = arith.constant 0 : index
    %c0_21 = arith.constant 0 : index
    %44 = vector.load %arg5[%c0_20, %c0_21] : memref<1x16xf32, #tpu.memory_space<vmem>>, vector<1x16xf32>
    %45 = vector.broadcast %44 : vector<1x16xf32> to vector<128x16xf32>
    %46 = arith.addf %43, %45 : vector<128x16xf32>
    %47 = vector.shape_cast %46 : vector<128x16xf32> to vector<1x8x16x16xf32>
    %c0_22 = arith.constant 0 : index
    %c0_23 = arith.constant 0 : index
    %c0_24 = arith.constant 0 : index
    %c0_25 = arith.constant 0 : index
    %48 = vector.load %arg6[%c0_22, %c0_23, %c0_24, %c0_25] : memref<1x8x16x16xf32, #tpu.memory_space<vmem>>, vector<1x8x16x16xf32>
    tpu.vector_store %arg6[%c0_22, %c0_23, %c0_24, %c0_25], %47 {strides = array<i32>} : memref<1x8x16x16xf32, #tpu.memory_space<vmem>>, vector<1x8x16x16xf32>,
    return
  }
  func.func @transform_0(%arg0: i32, %arg1: i32) -> (i32, i32, i32, i32) {
    %c0_i32 = arith.constant 0 : i32
    %c0_i32_0 = arith.constant 0 : i32
    %c0_i32_1 = arith.constant 0 : i32
    return %arg0, %arg1, %c0_i32, %c0_i32_0 : i32, i32, i32, i32
  }
  func.func @transform_1(%arg0: i32, %arg1: i32) -> (i32, i32, i32, i32, i32) {
    %c0_i32 = arith.constant 0 : i32
    %c0_i32_0 = arith.constant 0 : i32
    %c0_i32_1 = arith.constant 0 : i32
    %c0_i32_2 = arith.constant 0 : i32
    return %arg0, %arg1, %c0_i32, %c0_i32_0, %c0_i32_1 : i32, i32, i32, i32, i32
  }
  func.func @transform_2(%arg0: i32, %arg1: i32) -> (i32, i32, i32) {
    %c0_i32 = arith.constant 0 : i32
    %c0_i32_0 = arith.constant 0 : i32
    %c0_i32_1 = arith.constant 0 : i32
    %c0_i32_2 = arith.constant 0 : i32
    return %c0_i32, %c0_i32_0, %c0_i32_1 : i32, i32, i32
  }
  func.func @transform_3(%arg0: i32, %arg1: i32) -> (i32, i32) {
    %c0_i32 = arith.constant 0 : i32
    %c0_i32_0 = arith.constant 0 : i32
    %c0_i32_1 = arith.constant 0 : i32
    return %c0_i32, %c0_i32_0 : i32, i32
  }
  func.func @transform_4(%arg0: i32, %arg1: i32) -> (i32, i32, i32, i32) {
    %c0_i32 = arith.constant 0 : i32
    %c0_i32_0 = arith.constant 0 : i32
    %c0_i32_1 = arith.constant 0 : i32
    return %arg0, %arg1, %c0_i32, %c0_i32_0 : i32, i32, i32, i32
  }
}

</mosaic_0001>

<bundles_post_ra>
// kernel: tpu_custom_call.1
= control target key start
LH: loop header
LB: loop body
LE: loop exit
PB: predicated region body
PF: predicated region fallthrough
CT: control target
= control target key end

     0   :  { %9 = vsyncpa [#allocation3], 0  ;;  %s3618_s0 = inlined_call_operand.vmem [shape: f32[2,16,18,8], index: 0, kind: input, shape index: {}]   ;;  %s3619_s1 = inlined_call_operand.vmem [shape: f32[2,2,2,18,8], index: 1, kind: input, shape index: {}]   ;;  %s3620_s2 = inlined_call_operand.vmem [shape: f32[4,32,4], index: 2, kind: input, shape index: {}]   ;;  %s3621_s3 = inlined_call_operand.vmem [shape: f32[1,16], index: 3, kind: input, shape index: {}]   ;;  %s3622_s4 = inlined_call_operand.hbm [shape: f32[2,16,16,16], index: 4, kind: output, shape index: {}]  }
   0x1   :  { %11 = vsyncpa [#allocation3 + $0x1], 0  ;;  %s2530_s15 = smov 0   ;;  %s2532_s16 = smov 0  }
   0x2   :  { %s2534_s17 = smov 0   ;;  %s2536_s18 = smov 0  }
   0x3   :  { %s2538_s19 = smov 0   ;;  %s2540_s20 = smov 0  }
   0x4   :  { %s2542_s21 = smov 0   ;;  %s2544_s22 = smov 0  }
   0x5 LB: > { %3626 = sst [smem:[#allocation5_spill]] %s2492_s21  ;;  %s1987_s23 = sadd.s32 4294967295, %s2496_s22   ;;  %s2496_s22 = sphi %s2544_s22, %s17_s22   ;;  %s2492_s21 = sphi %s2542_s21, %s3633_s21   ;;  %s2488_s20 = sphi %s2540_s20, %s3638_s20   ;;  %s2484_s19 = sphi %s2538_s19, %s3631_s19   ;;  %s2480_s18 = sphi %s2536_s18, %s3637_s18   ;;  %s2476_s17 = sphi %s2534_s17, %s3636_s17   ;;  %s2472_s16 = sphi %s2532_s16, %s3635_s16   ;;  %s2468_s15 = sphi %s2530_s15, %s3634_s15  }
   0x6   : > { %s1988_s24 = sadd.s32 4294967294, %s2496_s22   ;;  %s26_s25 = sadd.s32 1, %s2488_s20 }
   0x7   : > { %p27_p0 = scmp.ge.s32.totalorder %s26_s25, 2  ;;  %s29_s26 = sadd.s32 1, %s2492_s21 }
   0x8   : > { %p146_p1 = scmp.ne.s32.totalorder %s2476_s17, %s2472_s16  ;;  %p147_p2 = scmp.eq.s32.totalorder %s1987_s23, 3 }
   0x9   : > { %s3640_s25 = smov (%p27_p0, %s26_s25), 0  ;;  %s3642_s26 = smov (!%p27_p0, %s29_s26), %s2492_s21 }
   0xa   : > { %3627 = sst [smem:[#allocation6_spill]] %s3640_s25  ;;  %s132_s27 = ssub.s32 %s2488_s20, %s3640_s25 }
   0xb   : > { %p2581_p3 = por %p147_p2, %p146_p1  ;;  %p31_p4 = scmp.ge.s32.totalorder %s3642_s26, 2 }
   0xc   : > { %p152_p5 = scmp.ne.s32.totalorder %s2472_s16, %s2468_s15  ;;  %p153_p6 = scmp.eq.s32.totalorder %s1988_s24, 3 }
   0xd   : > { %p1991_p7 = scmp.ge.s32.totalorder %s2496_s22, 1  ;;  %s3644_s26 = smov (%p31_p4, %s3642_s26), 0 }
   0xe   : > { %3629 = sst [smem:[#allocation7_spill]] %s3644_s26  ;;  %p2590_p8 = por %p153_p6, %p152_p5 }
   0xf   : > { %p203_p9 = scmp.lt.s32.totalorder %s2496_s22, 5  ;;  %s131_s30 = ssub.s32 %s2492_s21, %s3644_s26 }
  0x10   : > { %s136_s5 = sadd.s32 1, %s2476_s17  ;;  %s133_s6 = sor.u32 %s132_s27, %s131_s30 }
  0x11   : > { %p204_p10 = pnand %p1991_p7, %p203_p9  ;;  %p134_p11 = scmp.eq.s32.totalorder %s133_s6, 0 }
  0x12   : > { %p244_p12 = scmp.lt.s32.totalorder (!%p204_p10), %s2484_s19, 1  ;;  %p256_p13 = scmp.lt.s32.totalorder (!%p204_p10), %s2480_s18, 1  ;;  %v704_v0 = vld [vmem:[%s3620_s2] sm:$0xff] (!%p204_p10)  ;;  %v705_v1 = vld [vmem:[%s3620_s2 + $0x8] sm:$0xff] (!%p204_p10)  ;;  %v706_v6 = vld [vmem:[%s3620_s2 + $0x10] sm:$0xff] (!%p204_p10)  ;;  %vm310_vm0 = vcmask (!%p204_p10), 1040384  }
  0x13   : > { %s2599_s7 = scalar_select %p134_p11, %s2476_s17, %s136_s5  }
  0x14   : > { %207 = sbr.rel (%p204_p10) target bundleno = 737 (0x2e1), region = 36  ;;  %s1993_s8 = sshll.u32 (!%p204_p10), %s2480_s18, 3  ;;  %v2289_v2 = vpack.c.bf16 (!%p204_p10), %v705_v1, %v704_v0  ;;  %v707_v7 = vld [vmem:[%s3620_s2 + $0x18] sm:$0xff] (!%p204_p10)  ;;  %v2012_v21 = vld [vmem:[%s3620_s2 + $0x20] sm:$0xff] (!%p204_p10)  ;;  %v2013_v22 = vld [vmem:[%s3620_s2 + $0x28] sm:$0xff] (!%p204_p10)  ;;  %vm564_vm1 = vcmask (!%p204_p10), 64512  }
  0x15   : > { %p246_p0 = scmp.lt.s32.totalorder (!%p204_p10), %s1993_s8, 15  ;;  %v2293_v9 = vpack.c.bf16 (!%p204_p10), %v707_v7, %v706_v6  ;;  %s2499_s24 = smov (!%p204_p10), 24   ;;  %v2014_v23 = vld [vmem:[%s3620_s2 + $0x30] sm:$0xff] (!%p204_p10)  ;;  %v2015_v24 = vld [vmem:[%s3620_s2 + $0x38] sm:$0xff] (!%p204_p10)  ;;  %v2297_v25 = vpack.c.bf16 (!%p204_p10), %v2013_v22, %v2012_v21  ;;  %vm589_vm2 = vcmask (!%p204_p10), 130048   ;;  %vm614_vm3 = vcmask (!%p204_p10), 195584  }
  0x16   : > { %2290 = vmatprep.subr.bf16.mxu0 (!%p204_p10), %v2289_v2  ;;  %s2500_s27 = smov (!%p204_p10), 8   ;;  %v2301_v29 = vpack.c.bf16 (!%p204_p10), %v2015_v24, %v2014_v23  ;;  %vm663_vm4 = vcmask (!%p204_p10), 1046528   ;;  %vm708_vm5 = vcmask (!%p204_p10), 261120   ;;  %vm985_vm6 = vcmask (!%p204_p10), 1045504  }
  0x17   : > { %2292 = vmatpush3.bf16.msra.mxu0 (!%p204_p10), %v2289_v2  ;;  %2298 = vmatprep.subr.bf16.mxu1 (!%p204_p10), %v2297_v25  ;;  %vm1775_vm7 = vcmask (!%p204_p10), 31744   ;;  %vm1808_vm8 = vcmask (!%p204_p10), 97280  }
  0x18   : > { %2294 = vmatprep.subr.bf16.mxu0 (!%p204_p10), %v2293_v9  ;;  %2300 = vmatpush3.bf16.msra.mxu1 (!%p204_p10), %v2297_v25 }
  0x19   : > { %2302 = vmatprep.subr.bf16.mxu1 (!%p204_p10), %v2301_v29 }
  0x1b   : > { %s245_s9 = scalar_select %p244_p12, %s2484_s19, 1  ;;  %2296 = vmatpush3.bf16.msra.mxu0 %v2293_v9 }
  0x1c   : > { %s257_s10 = scalar_select %p256_p13, %s2480_s18, 1  ;;  %2304 = vmatpush3.bf16.msra.mxu1 %v2301_v29 }
  0x1d   : > { %s2324_s11 = smul.u32 12, %s245_s9  ;;  %s3646_s8 = smov (!%p246_p0, %s1993_s8), 15 }
  0x1e   : > { %s2323_s12 = smul.u32 6, %s257_s10  ;;  %s2498_s10 = smov 16  }
  0x1f   : > { %s2322_s14 = smul.u32 48, %s245_s9 }
  0x20   : > { %s260_s13 = sadd.s32 %s2324_s11, %s2323_s12  ;;  %s2321_s6 = smul.u32 3, %s3646_s8 }
  0x21   : > { %s1995_s5 = sshll.u32 %s260_s13, 3  ;;  %s2080_s8 = sshll.u32 %s2480_s18, 4 }
  0x22   : > { %s2615_s21 = scalar_lea.vmem %s3619_s1, %s1995_s5  ;;  %s250_s9 = sadd.s32 %s2322_s14, %s2321_s6 }
  0x23   : > { %v265_v3 = vld [vmem:[%s2615_s21 + $0x8] sm:$0xff]  ;;  %v264_v4 = vld [vmem:[%s2615_s21] sm:$0xff]  ;;  %s1994_s11 = sshll.u32 %s250_s9, 3  ;;  %v266_v8 = vld [vmem:[%s2615_s21 + $0x10] sm:$0x3]  ;;  %s2076_s12 = sshll.u32 %s2484_s19, 5 }
  0x24   : > { %419 = vrot.lane.b32.xlu0 %v265_v3, %s2498_s10  ;;  %417 = vrot.lane.b32.xlu1 %v264_v4, %s2498_s10  ;;  %v489_v5 = vrot.slane %v264_v4, 7  ;;  %s2630_s14 = scalar_lea.vmem %s3618_s0, %s1994_s11  ;;  %v490_v14 = vrot.slane %v265_v3, 7  ;;  %v927_v30 = vrot.slane %v266_v8, 7  ;;  %s1878_s25 = sadd.s32 %s2080_s8, %s2076_s12 }
  0x25   : > { %v2634_v10 = vld [vmem:[%s2630_s14 + $0x8] sm:$0xff]  ;;  %v2637_v11 = vld [vmem:[%s2630_s14] sm:$0xff]  ;;  %v2644_v15 = vld [vmem:[%s2630_s14 + $0x10] sm:$0x3]  ;;  %s2077_s18 = sshll.u32 %s1878_s25, 7 }
  0x26   : > { %v312_v12 = vrot.slane %v2634_v10, 7  ;;  %v311_v13 = vrot.slane %v2637_v11, 7  ;;  %v491_v16 = vsel %vm310_vm0, %v489_v5, %v490_v14  ;;  %v887_v18 = vrot.slane %v2644_v15, 7  ;;  %v2652_v19 = vld [vmem:[%s2630_s14 + $0x18] sm:$0xff]  ;;  %v2655_v20 = vld [vmem:[%s2630_s14 + $0x20] sm:$0xff]  ;;  %v2695_v36 = vld [vmem:[%s2630_s14 + $0x30] sm:$0xff]  ;;  %s3554_s23 = scalar_lea.hbm %s3622_s4, %s2077_s18 }
  0x27   : > { %v314_v27 = vrot.slane %v2652_v19, 7  ;;  %v315_v28 = vrot.slane %v2655_v20, 7  ;;  %v928_v32 = vsel %vm310_vm0, %v490_v14, %v927_v30  ;;  %v2683_v33 = vld [vmem:[%s2630_s14 + $0x28] sm:$0x3]  ;;  %v2698_v37 = vld [vmem:[%s2630_s14 + $0x38] sm:$0xff]  ;;  %v317_v38 = vrot.slane %v2695_v36, 7 }
  0x28   : > { %421 = vrot.lane.b32.xlu1 %v266_v8, %s2498_s10  ;;  %492 = vrot.lane.b32.xlu0 %v489_v5, %s2499_s24  ;;  %v313_v17 = vsel %vm310_vm0, %v311_v13, %v312_v12  ;;  %v888_v26 = vsel %vm310_vm0, %v312_v12, %v887_v18  ;;  %v889_v34 = vrot.slane %v2683_v33, 7  ;;  %v318_v39 = vrot.slane %v2698_v37, 7  ;;  %v2713_v41 = vld [vmem:[%s2630_s14 + $0x40] sm:$0x3]  ;;  %v2721_v43 = vld [vmem:[%s2630_s14 + $0x48] sm:$0xff] }
  0x29   : > { %v316_v31 = vsel %vm310_vm0, %v314_v27, %v315_v28  ;;  %v891_v42 = vrot.slane %v2713_v41, 7  ;;  %v2724_v44 = vld [vmem:[%s2630_s14 + $0x50] sm:$0xff]  ;;  %v320_v46 = vrot.slane %v2721_v43, 7  ;;  %v2739_v49 = vld [vmem:[%s2630_s14 + $0x58] sm:$0x3]  ;;  %v2751_v52 = vld [vmem:[%s2630_s14 + $0x60] sm:$0xff] }
  0x2a   : > { %v890_v35 = vsel %vm310_vm0, %v315_v28, %v889_v34  ;;  %v319_v40 = vsel %vm310_vm0, %v317_v38, %v318_v39  ;;  %v321_v47 = vrot.slane %v2724_v44, 7  ;;  %v893_v50 = vrot.slane %v2739_v49, 7  ;;  %v2754_v53 = vld [vmem:[%s2630_s14 + $0x68] sm:$0xff]  ;;  %v2769_v57 = vld [vmem:[%s2630_s14 + $0x70] sm:$0x3]  ;;  %v2777_v59 = vld [vmem:[%s2630_s14 + $0x78] sm:$0xff] }
  0x2b   : > { %v892_v45 = vsel %vm310_vm0, %v318_v39, %v891_v42  ;;  %v323_v54 = vrot.slane %v2751_v52, 7  ;;  %v324_v55 = vrot.slane %v2754_v53, 7  ;;  %v895_v58 = vrot.slane %v2769_v57, 7  ;;  %v2780_v60 = vld [vmem:[%s2630_s14 + $0x80] sm:$0xff]  ;;  %v2806_v3 = vld [vmem:[%s2630_s14 + $0x88] sm:$0x3] }
  0x2c   : > { %339 = vrot.lane.b32.xlu1 %v312_v12, %s2500_s27  ;;  %335 = vrot.lane.b32.xlu0 %v311_v13, %s2500_s27  ;;  %v322_v48 = vsel %vm310_vm0, %v320_v46, %v321_v47  ;;  %v894_v51 = vsel %vm310_vm0, %v321_v47, %v893_v50  ;;  %v2786_v62 = vrot.slane %v2777_v59, 7  ;;  %v2789_v63 = vrot.slane %v2780_v60, 7  ;;  %v2823_v8 = vld [vmem:[%s2630_s14 + $0x90] sm:$0xff]  ;;  %v2032_v42 = vld [vmem:[%s3620_s2 + $0x40] sm:$0xff] }
  0x2d   : > { %v325_v56 = vsel %vm310_vm0, %v323_v54, %v324_v55  ;;  %v896_v61 = vsel %vm310_vm0, %v324_v55, %v895_v58  ;;  %v897_v4 = vrot.slane %v2806_v3, 7 }
  0x2e   : > { %v2796_v0 = vsel %vm310_vm0, %v2786_v62, %v2789_v63 }
  0x2f   : > { %v2820_v7 = vsel %vm310_vm0, %v2789_v63, %v897_v4 }
  0x30   : > { %494 = vrot.lane.b32.xlu1 %v491_v16, %s2499_s24  ;;  %337 = vrot.lane.b32.xlu0 %v313_v17, %s2500_s27 }
  0x34   : > { %496 = vrot.lane.b32.xlu1 %v490_v14, %s2499_s24  ;;  %903 = vrot.lane.b32.xlu0 %v888_v26, %s2500_s27 }
  0x38   : > { %343 = vrot.lane.b32.xlu1 %v316_v31, %s2500_s27  ;;  %341 = vrot.lane.b32.xlu0 %v314_v27, %s2500_s27 }
  0x3c   : > { %345 = vrot.lane.b32.xlu1 %v315_v28, %s2500_s27  ;;  %929 = vrot.lane.b32.xlu0 %v928_v32, %s2499_s24 }
  0x40   : > { %425 = vrot.lane.b32.xlu1 %v2634_v10, %s2498_s10  ;;  %423 = vrot.lane.b32.xlu0 %v2637_v11, %s2498_s10 }
  0x44   : > { %498 = vrot.lane.b32.xlu1 %v311_v13, %s2499_s24  ;;  %427 = vrot.lane.b32.xlu0 %v2644_v15, %s2498_s10  ;;  %v2826_v13 = vld [vmem:[%s2630_s14 + $0x98] sm:$0xff] }
  0x45   : > { %v2838_v18 = vrot.slane %v2826_v13, 7 }
  0x48   : > { %905 = vrot.lane.b32.xlu1 %v890_v35, %s2500_s27  ;;  %500 = vrot.lane.b32.xlu0 %v313_v17, %s2499_s24  ;;  %v2835_v17 = vrot.slane %v2823_v8, 7 }
  0x4c   : > { %347 = vrot.lane.b32.xlu1 %v317_v38, %s2500_s27  ;;  %502 = vrot.lane.b32.xlu0 %v312_v12, %s2499_s24 }
  0x50   : > { %931 = vrot.lane.b32.xlu1 %v888_v26, %s2499_s24  ;;  %349 = vrot.lane.b32.xlu0 %v319_v40, %s2500_s27 }
  0x54   : > { %429 = vrot.lane.b32.xlu1 %v2652_v19, %s2498_s10  ;;  %351 = vrot.lane.b32.xlu0 %v318_v39, %s2500_s27 }
  0x58   : > { %433 = vrot.lane.b32.xlu1 %v2683_v33, %s2498_s10  ;;  %431 = vrot.lane.b32.xlu0 %v2655_v20, %s2498_s10 }
  0x5c   : > { %506 = vrot.lane.b32.xlu1 %v316_v31, %s2499_s24  ;;  %504 = vrot.lane.b32.xlu0 %v314_v27, %s2499_s24  ;;  %v2854_v27 = vsel %vm310_vm0, %v2835_v17, %v2838_v18 }
  0x60   : > { %508 = vrot.lane.b32.xlu1 %v315_v28, %s2499_s24  ;;  %907 = vrot.lane.b32.xlu0 %v892_v45, %s2500_s27 }
  0x64   : > { %355 = vrot.lane.b32.xlu1 %v322_v48, %s2500_s27  ;;  %353 = vrot.lane.b32.xlu0 %v320_v46, %s2500_s27 }
  0x68   : > { %357 = vrot.lane.b32.xlu1 %v321_v47, %s2500_s27  ;;  %933 = vrot.lane.b32.xlu0 %v890_v35, %s2499_s24 }
  0x6c   : > { %437 = vrot.lane.b32.xlu1 %v2698_v37, %s2498_s10  ;;  %435 = vrot.lane.b32.xlu0 %v2695_v36, %s2498_s10 }
  0x70   : > { %510 = vrot.lane.b32.xlu1 %v317_v38, %s2499_s24  ;;  %439 = vrot.lane.b32.xlu0 %v2713_v41, %s2498_s10 }
  0x74   : > { %909 = vrot.lane.b32.xlu1 %v894_v51, %s2500_s27  ;;  %512 = vrot.lane.b32.xlu0 %v319_v40, %s2499_s24 }
  0x78   : > { %359 = vrot.lane.b32.xlu1 %v323_v54, %s2500_s27  ;;  %514 = vrot.lane.b32.xlu0 %v318_v39, %s2499_s24 }
  0x7c   : > { %935 = vrot.lane.b32.xlu1 %v892_v45, %s2499_s24  ;;  %361 = vrot.lane.b32.xlu0 %v325_v56, %s2500_s27  ;;  %v2033_v45 = vld [vmem:[%s3620_s2 + $0x48] sm:$0xff] }
  0x80   : > { %441 = vrot.lane.b32.xlu1 %v2721_v43, %s2498_s10  ;;  %363 = vrot.lane.b32.xlu0 %v324_v55, %s2500_s27 }
  0x84   : > { %445 = vrot.lane.b32.xlu1 %v2739_v49, %s2498_s10  ;;  %443 = vrot.lane.b32.xlu0 %v2724_v44, %s2498_s10 }
  0x88   : > { %518 = vrot.lane.b32.xlu1 %v322_v48, %s2499_s24  ;;  %516 = vrot.lane.b32.xlu0 %v320_v46, %s2499_s24  ;;  %v2305_v46 = vpack.c.bf16 %v2033_v45, %v2032_v42 }
  0x8a   : > { %2306 = vmatprep.subr.bf16.mxu0 %v2305_v46 }
  0x8c   : > { %520 = vrot.lane.b32.xlu1 %v321_v47, %s2499_s24  ;;  %911 = vrot.lane.b32.xlu0 %v896_v61, %s2500_s27 }
  0x90   : > { %367 = vrot.lane.b32.xlu1 %v2796_v0, %s2500_s27  ;;  %365 = vrot.lane.b32.xlu0 %v2786_v62, %s2500_s27 }
  0x94   : > { %369 = vrot.lane.b32.xlu1 %v2789_v63, %s2500_s27  ;;  %937 = vrot.lane.b32.xlu0 %v894_v51, %s2499_s24 }
  0x96   : > { %v420_v1 = vpop.permute.xlu0 %419  ;;  %v418_v2 = vpop.permute.xlu1 %417 }
  0x98   : > { %449 = vrot.lane.b32.xlu1 %v2754_v53, %s2498_s10  ;;  %447 = vrot.lane.b32.xlu0 %v2751_v52, %s2498_s10 }
  0x9a   : > { %v2813_v5 = vpop.permute.xlu1 %421  ;;  %v493_v6 = vpop.permute.xlu0 %492 }
  0x9c   : > { %522 = vrot.lane.b32.xlu1 %v323_v54, %s2499_s24  ;;  %451 = vrot.lane.b32.xlu0 %v2769_v57, %s2498_s10  ;;  %v2052_v54 = vld [vmem:[%s3620_s2 + $0x60] sm:$0xff] }
  0x9e   : > { %v340_v9 = vpop.permute.xlu1 %339  ;;  %v336_v12 = vpop.permute.xlu0 %335 }
  0x9f   : > { %v565_v14 = vsel %vm564_vm1, %v2637_v11, %v336_v12  ;;  %v567_v21 = vsel %vm564_vm1, %v2644_v15, %v340_v9 }
  0xa0   : > { %v590_v16 = vsel %vm589_vm2, %v565_v14, %v418_v2  ;;  %913 = vrot.lane.b32.xlu1 %v2820_v7, %s2500_s27  ;;  %524 = vrot.lane.b32.xlu0 %v325_v56, %s2499_s24  ;;  %v592_v26 = vsel %vm589_vm2, %v567_v21, %v2813_v5 }
  0xa1   : > { %v615_v24 = vsel %vm614_vm3, %v590_v16, %v493_v6  ;;  %v2901_v16 = vld [vmem:[%s2630_s14 + $0xb0] sm:$0xff] }
  0xa2   : > { %v495_v22 = vpop.permute.xlu1 %494  ;;  %v338_v23 = vpop.permute.xlu0 %337  ;;  %v664_v30 = vrot.slane %v615_v24, 1  ;;  %v986_v32 = vrot.slane %v615_v24, 2 }
  0xa3   : > { %v566_v11 = vsel %vm564_vm1, %v2634_v10, %v338_v23  ;;  %v2916_v23 = vrot.slane %v2901_v16, 7 }
  0xa4   : > { %v591_v25 = vsel %vm589_vm2, %v566_v11, %v420_v1  ;;  %371 = vrot.lane.b32.xlu1 %v2835_v17, %s2500_s27  ;;  %526 = vrot.lane.b32.xlu0 %v324_v55, %s2499_s24  ;;  %v2053_v55 = vld [vmem:[%s3620_s2 + $0x68] sm:$0xff]  ;;  %v2888_v1 = vld [vmem:[%s2630_s14 + $0xa0] sm:$0x3] }
  0xa5   : > { %v616_v10 = vsel %vm614_vm3, %v591_v25, %v495_v22  ;;  %v899_v6 = vrot.slane %v2888_v1, 7 }
  0xa6   : > { %v497_v28 = vpop.permute.xlu1 %496  ;;  %v904_v29 = vpop.permute.xlu0 %903  ;;  %v665_v31 = vrot.slane %v616_v10, 1  ;;  %v987_v34 = vrot.slane %v616_v10, 2 }
  0xa7   : > { %v617_v35 = vsel %vm614_vm3, %v592_v26, %v497_v28  ;;  %v953_v51 = vsel %vm564_vm1, %v2644_v15, %v904_v29  ;;  %v2313_v15 = vpack.c.bf16 %v2053_v55, %v2052_v54  ;;  %v2910_v21 = vsel %vm310_vm0, %v2838_v18, %v899_v6  ;;  %v2055_v54 = vld [vmem:[%s3620_s2 + $0x78] sm:$0xff] }
  0xa8   : > { %v667_v38 = vrot.slane %v617_v35, 1  ;;  %939 = vrot.lane.b32.xlu1 %v896_v61, %s2499_s24  ;;  %373 = vrot.lane.b32.xlu0 %v2854_v27, %s2500_s27  ;;  %v666_v39 = vsel %vm663_vm4, %v664_v30, %v665_v31  ;;  %v988_v40 = vsel %vm985_vm6, %v986_v32, %v987_v34  ;;  %v961_v58 = vsel %vm589_vm2, %v953_v51, %v2813_v5  ;;  %v2898_v5 = vld [vmem:[%s2630_s14 + $0xa8] sm:$0xff]  ;;  %v2035_v35 = vld [vmem:[%s3620_s2 + $0x58] sm:$0xff] }
  0xa9   : > { %2169 = vmatprep.mubr.msk.f32.mxu0 %vm708_vm5, %v666_v39  ;;  %2201 = vmatprep.mubr.msk.f32.mxu1 %vm708_vm5, %v988_v40  ;;  %v2913_v22 = vrot.slane %v2898_v5, 7  ;;  %v2054_v51 = vld [vmem:[%s3620_s2 + $0x70] sm:$0xff] }
  0xaa   : > { %v344_v47 = vpop.permute.xlu1 %343  ;;  %v342_v48 = vpop.permute.xlu0 %341  ;;  %v668_v50 = vsel %vm663_vm4, %v665_v31, %v667_v38  ;;  %2314 = vmatprep.subr.bf16.mxu1 %v2313_v15 }
  0xab   : > { %2170 = vmatmul.mubr.msk.f32.vlgmr.msra.gmra.mrb[0].mxu0 %vm708_vm5, %v668_v50  ;;  %v568_v25 = vsel %vm564_vm1, %v2652_v19, %v342_v48  ;;  %v2931_v10 = vsel %vm310_vm0, %v2913_v22, %v2916_v23 }
  0xac   : > { %453 = vrot.lane.b32.xlu1 %v2777_v59, %s2498_s10  ;;  %375 = vrot.lane.b32.xlu0 %v2838_v18, %s2500_s27 }
  0xad   : > { %2308 = vmatpush3.bf16.msra.mxu0 %v2305_v46 }
  0xae   : > { %v346_v56 = vpop.permute.xlu1 %345  ;;  %v930_v61 = vpop.permute.xlu0 %929 }
  0xaf   : > { %v969_v2 = vsel %vm614_vm3, %v961_v58, %v930_v61  ;;  %v570_v38 = vsel %vm564_vm1, %v2683_v33, %v346_v56 }
  0xb0   : > { %v989_v4 = vrot.slane %v969_v2, 2  ;;  %457 = vrot.lane.b32.xlu1 %v2806_v3, %s2498_s10  ;;  %455 = vrot.lane.b32.xlu0 %v2780_v60, %s2498_s10  ;;  %v2976_v2 = vld [vmem:[%s2630_s14 + $0xb8] sm:$0x3]  ;;  %s240_s14 = sand.u32 1, %s2472_s16  }
  0xb1   : > { %v901_v6 = vrot.slane %v2976_v2, 7  ;;  %s3565_s30 = scalar_lea.sflag [#allocation3], %s240_s14 }
  0xb2   : > { %v426_v9 = vpop.permute.xlu1 %425  ;;  %v424_v12 = vpop.permute.xlu0 %423  ;;  %v990_v14 = vsel %vm985_vm6, %v987_v34, %v989_v4 }
  0xb3   : > { %2202 = vmatmul.mubr.msk.f32.vlgmr.msra.gmra.mrb[0].mxu1 %vm708_vm5, %v990_v14 }
  0xb4   : > { %530 = vrot.lane.b32.xlu1 %v2796_v0, %s2499_s24  ;;  %528 = vrot.lane.b32.xlu0 %v2786_v62, %s2499_s24  ;;  %v593_v0 = vsel %vm589_vm2, %v568_v25, %v424_v12  ;;  %v569_v62 = vsel %vm564_vm1, %v2655_v20, %v344_v47  ;;  %v2034_v20 = vld [vmem:[%s3620_s2 + $0x50] sm:$0xff] }
  0xb5   : > { %2316 = vmatpush3.bf16.msra.mxu1 %v2313_v15  ;;  %v594_v19 = vsel %vm589_vm2, %v569_v62, %v426_v9  ;;  %v2309_v39 = vpack.c.bf16 %v2035_v35, %v2034_v20  ;;  %v3007_v62 = vld [vmem:[%s2615_s21 + $0x18] sm:$0xff] }
  0xb6   : > { %v499_v11 = vpop.permute.xlu1 %498  ;;  %v428_v24 = vpop.permute.xlu0 %427 }
  0xb7   : > { %v618_v26 = vsel %vm614_vm3, %v593_v0, %v499_v11  ;;  %v595_v40 = vsel %vm589_vm2, %v570_v38, %v428_v24  ;;  %2310 = vmatprep.subr.bf16.mxu0 %v2309_v39  ;;  %v2997_v11 = vsel %vm310_vm0, %v2916_v23, %v901_v6  ;;  %v3000_v0 = vld [vmem:[%s2615_s21 + $0x20] sm:$0xff] }
  0xb8   : > { %532 = vrot.lane.b32.xlu1 %v2789_v63, %s2499_s24  ;;  %915 = vrot.lane.b32.xlu0 %v2910_v21, %s2500_s27  ;;  %v669_v63 = vrot.slane %v618_v26, 1  ;;  %v991_v31 = vrot.slane %v618_v26, 2 }
  0xb9   : > { %2312 = vmatpush3.bf16.msra.mxu0 %v2309_v39 }
  0xba   : > { %v906_v28 = vpop.permute.xlu1 %905  ;;  %v501_v29 = vpop.permute.xlu0 %500 }
  0xbb   : > { %v619_v30 = vsel %vm614_vm3, %v594_v19, %v501_v29  ;;  %v954_v48 = vsel %vm564_vm1, %v2683_v33, %v906_v28  ;;  %v2317_v33 = vpack.c.bf16 %v2055_v54, %v2054_v51  ;;  %v1211_v19 = vrot.slane %v3000_v0, 7 }
  0xbc   : > { %v670_v32 = vrot.slane %v619_v30, 1  ;;  %v992_v34 = vrot.slane %v619_v30, 2  ;;  %379 = vrot.lane.b32.xlu1 %v2931_v10, %s2500_s27  ;;  %377 = vrot.lane.b32.xlu0 %v2913_v22, %s2500_s27  ;;  %v962_v56 = vsel %vm589_vm2, %v954_v48, %v428_v24 }
  0xbd   : > { %2318 = vmatprep.subr.bf16.mxu1 %v2317_v33 }
  0xbe   : > { %v348_v42 = vpop.permute.xlu1 %347  ;;  %v503_v45 = vpop.permute.xlu0 %502  ;;  %v2949_v46 = vsel %vm663_vm4, %v669_v63, %v670_v32  ;;  %v2952_v47 = vsel %vm985_vm6, %v991_v31, %v992_v34  ;;  %2320 = vmatpush3.bf16.msra.mxu1 %v2317_v33 }
  0xbf   : > { %v620_v50 = vsel %vm614_vm3, %v595_v40, %v503_v45  ;;  %2172 = vmatprep.mubr.msk.f32.mxu0 %vm708_vm5, %v2949_v46  ;;  %2204 = vmatprep.mubr.msk.f32.mxu1 %vm708_vm5, %v2952_v47 }
  0xc0   : > { %v672_v55 = vrot.slane %v620_v50, 1  ;;  %381 = vrot.lane.b32.xlu1 %v2916_v23, %s2500_s27  ;;  %941 = vrot.lane.b32.xlu0 %v2820_v7, %s2499_s24 }
  0xc2   : > { %v932_v15 = vpop.permute.xlu1 %931  ;;  %v350_v58 = vpop.permute.xlu0 %349  ;;  %v2973_v61 = vsel %vm663_vm4, %v670_v32, %v672_v55  ;;  %v1210_v32 = vrot.slane %v3007_v62, 7 }
  0xc3   : > { %v970_v4 = vsel %vm614_vm3, %v962_v56, %v932_v15  ;;  %2173 = vmatmul.mubr.msk.f32.gmra.mrb[2].mxu0 %vm708_vm5, %v2973_v61  ;;  %v572_v26 = vsel %vm564_vm1, %v2698_v37, %v350_v58  ;;  %v3052_v58 = vld [vmem:[%s2615_s21 + $0x28] sm:$0x3]  ;;  %s2501_s21 = smov 4  }
  0xc4   : > { %v994_v7 = vrot.slane %v970_v4, 2  ;;  %461 = vrot.lane.b32.xlu1 %v2826_v13, %s2498_s10  ;;  %459 = vrot.lane.b32.xlu0 %v2823_v8, %s2498_s10  ;;  %v1212_v38 = vsel %vm310_vm0, %v1210_v32, %v1211_v19 }
  0xc6   : > { %v430_v9 = vpop.permute.xlu1 %429  ;;  %v352_v12 = vpop.permute.xlu0 %351  ;;  %v2987_v14 = vsel %vm985_vm6, %v992_v34, %v994_v7 }
  0xc7   : > { %2205 = vmatmul.mubr.msk.f32.gmra.mrb[2].mxu1 %vm708_vm5, %v2987_v14  ;;  %v573_v37 = vsel %vm564_vm1, %v2713_v41, %v352_v12 }
  0xc8   : > { %534 = vrot.lane.b32.xlu1 %v2835_v17, %s2499_s24  ;;  %463 = vrot.lane.b32.xlu0 %v2888_v1, %s2498_s10  ;;  %v571_v17 = vsel %vm564_vm1, %v2695_v36, %v348_v42 }
  0xc9   : > { %v596_v28 = vsel %vm589_vm2, %v571_v17, %v430_v9 }
  0xca   : > { %v434_v24 = vpop.permute.xlu1 %433  ;;  %v432_v25 = vpop.permute.xlu0 %431 }
  0xcb   : > { %v597_v29 = vsel %vm589_vm2, %v572_v26, %v432_v25  ;;  %v598_v39 = vsel %vm589_vm2, %v573_v37, %v434_v24 }
  0xcc   : > { %917 = vrot.lane.b32.xlu1 %v2997_v11, %s2500_s27  ;;  %536 = vrot.lane.b32.xlu0 %v2854_v27, %s2499_s24 }
  0xce   : > { %v507_v30 = vpop.permute.xlu1 %506  ;;  %v505_v63 = vpop.permute.xlu0 %504 }
  0xcf   : > { %v622_v31 = vsel %vm614_vm3, %v597_v29, %v507_v30  ;;  %v621_v27 = vsel %vm614_vm3, %v596_v28, %v505_v63 }
  0xd0   : > { %v675_v34 = vrot.slane %v622_v31, 1  ;;  %v997_v20 = vrot.slane %v622_v31, 2  ;;  %v674_v36 = vrot.slane %v621_v27, 1  ;;  %v996_v35 = vrot.slane %v621_v27, 2  ;;  %943 = vrot.lane.b32.xlu1 %v2910_v21, %s2499_s24  ;;  %538 = vrot.lane.b32.xlu0 %v2838_v18, %s2499_s24 }
  0xd2   : > { %v509_v40 = vpop.permute.xlu1 %508  ;;  %v908_v42 = vpop.permute.xlu0 %907  ;;  %v3028_v45 = vsel %vm663_vm4, %v674_v36, %v675_v34  ;;  %v3031_v48 = vsel %vm985_vm6, %v996_v35, %v997_v20 }
  0xd3   : > { %v623_v21 = vsel %vm614_vm3, %v598_v39, %v509_v40  ;;  %2175 = vmatprep.mubr.msk.f32.mxu0 %vm708_vm5, %v3028_v45  ;;  %2207 = vmatprep.mubr.msk.f32.mxu1 %vm708_vm5, %v3031_v48  ;;  %v955_v55 = vsel %vm564_vm1, %v2713_v41, %v908_v42  ;;  %v1412_v41 = vrot.slane %v3052_v58, 7 }
  0xd4   : > { %v677_v18 = vrot.slane %v623_v21, 1  ;;  %1213 = vrot.lane.b32.xlu0 %v1210_v32, %s2500_s27  ;;  %1215 = vrot.lane.b32.xlu1 %v1212_v38, %s2500_s27  ;;  %v963_v15 = vsel %vm589_vm2, %v955_v55, %v434_v24 }
  0xd5   : > { %v1413_v24 = vsel %vm310_vm0, %v1211_v19, %v1412_v41 }
  0xd6   : > { %v356_v50 = vpop.permute.xlu1 %355  ;;  %v354_v51 = vpop.permute.xlu0 %353  ;;  %v3041_v54 = vsel %vm663_vm4, %v675_v34, %v677_v18 }
  0xd7   : > { %2176 = vmatmul.mubr.msk.f32.gmra.mrb[4].mxu0 %vm708_vm5, %v3041_v54  ;;  %v574_v26 = vsel %vm564_vm1, %v2721_v43, %v354_v51 }
  0xd8   : > { %1217 = vrot.lane.b32.xlu0 %v1211_v19, %s2500_s27  ;;  %1222 = vrot.lane.b32.xlu1 %v2898_v5, %s2498_s10 }
  0xda   : > { %v358_v33 = vpop.permute.xlu1 %357  ;;  %v934_v56 = vpop.permute.xlu0 %933 }
  0xdb   : > { %v971_v4 = vsel %vm614_vm3, %v963_v15, %v934_v56 }
  0xdc   : > { %v999_v7 = vrot.slane %v971_v4, 2  ;;  %1224 = vrot.lane.b32.xlu0 %v2901_v16, %s2498_s10  ;;  %1226 = vrot.lane.b32.xlu1 %v2976_v2, %s2498_s10  ;;  %s2502_s10 = smov 12  }
  0xde   : > { %v438_v6 = vpop.permute.xlu1 %437  ;;  %v436_v9 = vpop.permute.xlu0 %435  ;;  %v3061_v12 = vsel %vm985_vm6, %v997_v20, %v999_v7 }
  0xdf   : > { %2208 = vmatmul.mubr.msk.f32.gmra.mrb[4].mxu1 %vm708_vm5, %v3061_v12  ;;  %v599_v28 = vsel %vm589_vm2, %v574_v26, %v436_v9 }
  0xe0   : > { %1231 = vrot.lane.b32.xlu0 %v2913_v22, %s2499_s24  ;;  %1233 = vrot.lane.b32.xlu1 %v2931_v10, %s2499_s24  ;;  %v575_v22 = vsel %vm564_vm1, %v2724_v44, %v356_v50 }
  0xe1   : > { %v600_v10 = vsel %vm589_vm2, %v575_v22, %v438_v6 }
  0xe2   : > { %v511_v25 = vpop.permute.xlu1 %510  ;;  %v440_v17 = vpop.permute.xlu0 %439 }
  0xe3   : > { %v624_v29 = vsel %vm614_vm3, %v599_v28, %v511_v25 }
  0xe4   : > { %1414 = vrot.lane.b32.xlu0 %v1413_v24, %s2500_s27  ;;  %1235 = vrot.lane.b32.xlu1 %v2916_v23, %s2499_s24  ;;  %v679_v31 = vrot.slane %v624_v29, 1  ;;  %v1001_v43 = vrot.slane %v624_v29, 2  ;;  %v576_v23 = vsel %vm564_vm1, %v2739_v49, %v358_v33 }
  0xe5   : > { %v601_v44 = vsel %vm589_vm2, %v576_v23, %v440_v17 }
  0xe6   : > { %v910_v19 = vpop.permute.xlu1 %909  ;;  %v513_v30 = vpop.permute.xlu0 %512 }
  0xe7   : > { %v625_v63 = vsel %vm614_vm3, %v600_v10, %v513_v30  ;;  %v956_v37 = vsel %vm564_vm1, %v2739_v49, %v910_v19 }
  0xe8   : > { %v680_v27 = vrot.slane %v625_v63, 1  ;;  %v1002_v32 = vrot.slane %v625_v63, 2  ;;  %1417 = vrot.lane.b32.xlu0 %v2997_v11, %s2499_s24  ;;  %v964_v40 = vsel %vm589_vm2, %v956_v37, %v440_v17  ;;  %s1992_s24 = sshll.u32 %s240_s14, 7 }
  0xe9   : > { %s3441_s11 = scalar_lea.vmem [#allocation2], %s1992_s24 }
  0xea   : > { %v360_v34 = vpop.permute.xlu1 %359  ;;  %v515_v20 = vpop.permute.xlu0 %514  ;;  %v3087_v36 = vsel %vm663_vm4, %v679_v31, %v680_v27  ;;  %v3090_v35 = vsel %vm985_vm6, %v1001_v43, %v1002_v32  ;;  %s1881_s19 = sshll.u32 %s3441_s11, 4  ;;  %s3557_s19 = int_to_ptr.vmem [resolvable:$true] %s1881_s19 }
  0xeb   : > { %v626_v38 = vsel %vm614_vm3, %v601_v44, %v515_v20  ;;  %2178 = vmatprep.mubr.msk.f32.mxu0 %vm708_vm5, %v3087_v36  ;;  %2210 = vmatprep.mubr.msk.f32.mxu1 %vm708_vm5, %v3090_v35  ;;  %v577_v56 = vsel %vm564_vm1, %v2751_v52, %v360_v34  ;;  %s2402_s5 = scalar_lea.vmem %s3557_s19, 2048 }
  0xec   : > { %v682_v11 = vrot.slane %v626_v38, 1  ;;  %p2403_p1 = scmp.ne.s32.totalorder %s3557_s19, %s2402_s5 }
  0xee   : > { %v936_v39 = vpop.permute.xlu1 %935  ;;  %v362_v42 = vpop.permute.xlu0 %361  ;;  %v3101_v21 = vsel %vm663_vm4, %v680_v27, %v682_v11  ;;  %p2404_p2 = pnand %p2403_p1, %p2581_p3 }
  0xef   : > { %v972_v18 = vsel %vm614_vm3, %v964_v40, %v936_v39  ;;  %2179 = vmatmul.mubr.msk.f32.gmra.mrb[6].mxu0 %vm708_vm5, %v3101_v21  ;;  %v578_v4 = vsel %vm564_vm1, %v2754_v53, %v362_v42 }
  0xf0   : > { %v1004_v49 = vrot.slane %v972_v18, 2  ;;  %p2405_p4 = pneg %p2404_p2 }
  0xf2   : > { %v442_v50 = vpop.permute.xlu1 %441  ;;  %v364_v51 = vpop.permute.xlu0 %363  ;;  %v3107_v55 = vsel %vm985_vm6, %v1002_v32, %v1004_v49 }
  0xf3   : > { %2211 = vmatmul.mubr.msk.f32.gmra.mrb[6].mxu1 %vm708_vm5, %v3107_v55  ;;  %v602_v7 = vsel %vm589_vm2, %v577_v56, %v442_v50  ;;  %v579_v52 = vsel %vm564_vm1, %v2769_v57, %v364_v51 }
  0xf6   : > { %v446_v33 = vpop.permute.xlu1 %445  ;;  %v444_v15 = vpop.permute.xlu0 %443 }
  0xf7   : > { %v603_v41 = vsel %vm589_vm2, %v578_v4, %v444_v15  ;;  %v604_v29 = vsel %vm589_vm2, %v579_v52, %v446_v33 }
  0xfa   : > { %v519_v6 = vpop.permute.xlu1 %518  ;;  %v517_v9 = vpop.permute.xlu0 %516 }
  0xfb   : > { %v628_v24 = vsel %vm614_vm3, %v603_v41, %v519_v6  ;;  %v627_v25 = vsel %vm614_vm3, %v602_v7, %v517_v9 }
  0xfc   : > { %v685_v17 = vrot.slane %v628_v24, 1  ;;  %v1007_v26 = vrot.slane %v628_v24, 2  ;;  %v684_v28 = vrot.slane %v627_v25, 1  ;;  %v1006_v22 = vrot.slane %v627_v25, 2 }
  0xfe   : > { %v521_v53 = vpop.permute.xlu1 %520  ;;  %v912_v10 = vpop.permute.xlu0 %911  ;;  %v3123_v19 = vsel %vm663_vm4, %v684_v28, %v685_v17  ;;  %v3126_v30 = vsel %vm985_vm6, %v1006_v22, %v1007_v26 }
  0xff   : > { %v629_v63 = vsel %vm614_vm3, %v604_v29, %v521_v53  ;;  %2181 = vmatprep.mubr.msk.f32.mxu0 %vm708_vm5, %v3123_v19  ;;  %2213 = vmatprep.mubr.msk.f32.mxu1 %vm708_vm5, %v3126_v30  ;;  %v957_v23 = vsel %vm564_vm1, %v2769_v57, %v912_v10 }
 0x100   : > { %v687_v31 = vrot.slane %v629_v63, 1  ;;  %v965_v34 = vsel %vm589_vm2, %v957_v23, %v446_v33 }
 0x102   : > { %v368_v43 = vpop.permute.xlu1 %367  ;;  %v366_v27 = vpop.permute.xlu0 %365  ;;  %v3134_v32 = vsel %vm663_vm4, %v685_v17, %v687_v31 }
 0x103   : > { %2182 = vmatmul.mubr.msk.f32.gmra.mrb[8].mxu0 %vm708_vm5, %v3134_v32  ;;  %v580_v18 = vsel %vm564_vm1, %v2777_v59, %v366_v27  ;;  %v581_v50 = vsel %vm564_vm1, %v2780_v60, %v368_v43 }
 0x106   : > { %v370_v44 = vpop.permute.xlu1 %369  ;;  %v938_v20 = vpop.permute.xlu0 %937 }
 0x107   : > { %v973_v37 = vsel %vm614_vm3, %v965_v34, %v938_v20  ;;  %v582_v59 = vsel %vm564_vm1, %v2806_v3, %v370_v44 }
 0x108   : > { %v1009_v38 = vrot.slane %v973_v37, 2 }
 0x10a   : > { %v450_v11 = vpop.permute.xlu1 %449  ;;  %v448_v39 = vpop.permute.xlu0 %447  ;;  %v3143_v40 = vsel %vm985_vm6, %v1007_v26, %v1009_v38 }
 0x10b   : > { %2214 = vmatmul.mubr.msk.f32.gmra.mrb[8].mxu1 %vm708_vm5, %v3143_v40  ;;  %v605_v49 = vsel %vm589_vm2, %v580_v18, %v448_v39  ;;  %v606_v33 = vsel %vm589_vm2, %v581_v50, %v450_v11 }
 0x10e   : > { %v523_v42 = vpop.permute.xlu1 %522  ;;  %v452_v57 = vpop.permute.xlu0 %451 }
 0x10f   : > { %v630_v51 = vsel %vm614_vm3, %v605_v49, %v523_v42  ;;  %v607_v24 = vsel %vm589_vm2, %v582_v59, %v452_v57 }
 0x110   : > { %v689_v7 = vrot.slane %v630_v51, 1  ;;  %v1011_v41 = vrot.slane %v630_v51, 2 }
 0x112   : > { %v914_v15 = vpop.permute.xlu1 %913  ;;  %v525_v56 = vpop.permute.xlu0 %524 }
 0x113   : > { %v631_v4 = vsel %vm614_vm3, %v606_v33, %v525_v56  ;;  %v958_v28 = vsel %vm564_vm1, %v2806_v3, %v914_v15 }
 0x114   : > { %v690_v6 = vrot.slane %v631_v4, 1  ;;  %v1012_v9 = vrot.slane %v631_v4, 2  ;;  %v966_v53 = vsel %vm589_vm2, %v958_v28, %v452_v57 }
 0x116   : > { %v372_v25 = vpop.permute.xlu1 %371  ;;  %v527_v17 = vpop.permute.xlu0 %526  ;;  %v3159_v60 = vsel %vm663_vm4, %v689_v7, %v690_v6  ;;  %v3162_v26 = vsel %vm985_vm6, %v1011_v41, %v1012_v9 }
 0x117   : > { %v632_v22 = vsel %vm614_vm3, %v607_v24, %v527_v17  ;;  %2184 = vmatprep.mubr.msk.f32.mxu0 %vm708_vm5, %v3159_v60  ;;  %2216 = vmatprep.mubr.msk.f32.mxu1 %vm708_vm5, %v3162_v26  ;;  %v583_v20 = vsel %vm564_vm1, %v2823_v8, %v372_v25 }
 0x118   : > { %v692_v52 = vrot.slane %v632_v22, 1 }
 0x11a   : > { %v940_v29 = vpop.permute.xlu1 %939  ;;  %v374_v10 = vpop.permute.xlu0 %373  ;;  %v3173_v63 = vsel %vm663_vm4, %v690_v6, %v692_v52 }
 0x11b   : > { %v974_v31 = vsel %vm614_vm3, %v966_v53, %v940_v29  ;;  %2185 = vmatmul.mubr.msk.f32.gmra.mrb[10].mxu0 %vm708_vm5, %v3173_v63  ;;  %v584_v37 = vsel %vm564_vm1, %v2826_v13, %v374_v10 }
 0x11c   : > { %v1014_v3 = vrot.slane %v974_v31, 2 }
 0x11e   : > { %v454_v43 = vpop.permute.xlu1 %453  ;;  %v376_v27 = vpop.permute.xlu0 %375  ;;  %v3179_v23 = vsel %vm985_vm6, %v1012_v9, %v1014_v3 }
 0x11f   : > { %2217 = vmatmul.mubr.msk.f32.gmra.mrb[10].mxu1 %vm708_vm5, %v3179_v23  ;;  %v608_v38 = vsel %vm589_vm2, %v583_v20, %v454_v43  ;;  %v585_v8 = vsel %vm564_vm1, %v2888_v1, %v376_v27 }
 0x122   : > { %v458_v44 = vpop.permute.xlu1 %457  ;;  %v456_v34 = vpop.permute.xlu0 %455 }
 0x123   : > { %v609_v11 = vsel %vm589_vm2, %v584_v37, %v456_v34  ;;  %v610_v15 = vsel %vm589_vm2, %v585_v8, %v458_v44 }
 0x126   : > { %v531_v39 = vpop.permute.xlu1 %530  ;;  %v529_v42 = vpop.permute.xlu0 %528 }
 0x127   : > { %v634_v57 = vsel %vm614_vm3, %v609_v11, %v531_v39  ;;  %v633_v18 = vsel %vm614_vm3, %v608_v38, %v529_v42 }
 0x128   : > { %v695_v49 = vrot.slane %v634_v57, 1  ;;  %v1017_v50 = vrot.slane %v634_v57, 2  ;;  %v694_v51 = vrot.slane %v633_v18, 1  ;;  %v1016_v33 = vrot.slane %v633_v18, 2 }
 0x12a   : > { %v533_v13 = vpop.permute.xlu1 %532  ;;  %v916_v56 = vpop.permute.xlu0 %915  ;;  %v3195_v4 = vsel %vm663_vm4, %v694_v51, %v695_v49  ;;  %v3198_v7 = vsel %vm985_vm6, %v1016_v33, %v1017_v50 }
 0x12b   : > { %v635_v41 = vsel %vm614_vm3, %v610_v15, %v533_v13  ;;  %2187 = vmatprep.mubr.msk.f32.mxu0 %vm708_vm5, %v3195_v4  ;;  %2219 = vmatprep.mubr.msk.f32.mxu1 %vm708_vm5, %v3198_v7  ;;  %v959_v25 = vsel %vm564_vm1, %v2888_v1, %v916_v56 }
 0x12c   : > { %v697_v6 = vrot.slane %v635_v41, 1  ;;  %v967_v28 = vsel %vm589_vm2, %v959_v25, %v458_v44 }
 0x12e   : > { %v380_v9 = vpop.permute.xlu1 %379  ;;  %v378_v59 = vpop.permute.xlu0 %377  ;;  %v3206_v24 = vsel %vm663_vm4, %v695_v49, %v697_v6 }
 0x12f   : > { %2188 = vmatmul.mubr.msk.f32.gmra.mrb[12].mxu0 %vm708_vm5, %v3206_v24  ;;  %v586_v43 = vsel %vm564_vm1, %v2898_v5, %v378_v59  ;;  %v587_v44 = vsel %vm564_vm1, %v2901_v16, %v380_v9 }
 0x132   : > { %v382_v17 = vpop.permute.xlu1 %381  ;;  %v942_v22 = vpop.permute.xlu0 %941 }
 0x133   : > { %v975_v52 = vsel %vm614_vm3, %v967_v28, %v942_v22  ;;  %v588_v49 = vsel %vm564_vm1, %v2976_v2, %v382_v17 }
 0x134   : > { %v1019_v29 = vrot.slane %v975_v52, 2 }
 0x136   : > { %v462_v53 = vpop.permute.xlu1 %461  ;;  %v460_v10 = vpop.permute.xlu0 %459  ;;  %v3215_v31 = vsel %vm985_vm6, %v1017_v50, %v1019_v29 }
 0x137   : > { %2220 = vmatmul.mubr.msk.f32.gmra.mrb[12].mxu1 %vm708_vm5, %v3215_v31  ;;  %v611_v27 = vsel %vm589_vm2, %v586_v43, %v460_v10  ;;  %v612_v20 = vsel %vm589_vm2, %v587_v44, %v462_v53 }
 0x13a   : > { %v535_v3 = vpop.permute.xlu1 %534  ;;  %v464_v1 = vpop.permute.xlu0 %463 }
 0x13b   : > { %v636_v34 = vsel %vm614_vm3, %v611_v27, %v535_v3  ;;  %v613_v16 = vsel %vm589_vm2, %v588_v49, %v464_v1 }
 0x13c   : > { %v699_v42 = vrot.slane %v636_v34, 1  ;;  %v1021_v57 = vrot.slane %v636_v34, 2 }
 0x13e   : > { %v918_v37 = vpop.permute.xlu1 %917  ;;  %v537_v38 = vpop.permute.xlu0 %536 }
 0x13f   : > { %v960_v11 = vsel %vm564_vm1, %v2976_v2, %v918_v37  ;;  %v637_v39 = vsel %vm614_vm3, %v612_v20, %v537_v38 }
 0x140   : > { %v700_v18 = vrot.slane %v637_v39, 1  ;;  %v1022_v5 = vrot.slane %v637_v39, 2  ;;  %v968_v51 = vsel %vm589_vm2, %v960_v11, %v464_v1 }
 0x142   : > { %v944_v50 = vpop.permute.xlu1 %943  ;;  %v539_v33 = vpop.permute.xlu0 %538  ;;  %v3234_v8 = vsel %vm663_vm4, %v699_v42, %v700_v18  ;;  %v3237_v15 = vsel %vm985_vm6, %v1021_v57, %v1022_v5 }
 0x143   : > { %v976_v13 = vsel %vm614_vm3, %v968_v51, %v944_v50  ;;  %v638_v56 = vsel %vm614_vm3, %v613_v16, %v539_v33  ;;  %2190 = vmatprep.mubr.msk.f32.mxu0 %vm708_vm5, %v3234_v8  ;;  %2222 = vmatprep.mubr.msk.f32.mxu1 %vm708_vm5, %v3237_v15 }
 0x144   : > { %v1024_v2 = vrot.slane %v976_v13, 2  ;;  %v702_v41 = vrot.slane %v638_v56, 1 }
 0x146   : > { %v703_v6 = vsel %vm663_vm4, %v700_v18, %v702_v41  ;;  %v1025_v9 = vsel %vm985_vm6, %v1022_v5, %v1024_v2  ;;  %v1214_v59 = vpop.permute.xlu0 %1213  ;;  %v1216_v25 = vpop.permute.xlu1 %1215 }
 0x147   : > { %2191 = vmatmul.mubr.msk.f32.gmra.mrb[14].mxu0 %vm708_vm5, %v703_v6  ;;  %2223 = vmatmul.mubr.msk.f32.gmra.mrb[14].mxu1 %vm708_vm5, %v1025_v9 }
 0x148   : > { %2233 = vmatprep.mubr.msk.f32.mxu0 %vm708_vm5, %v2949_v46  ;;  %2265 = vmatprep.mubr.msk.f32.mxu1 %vm708_vm5, %v2952_v47  ;;  %v1240_v47 = vsel %vm564_vm1, %v3007_v62, %v1214_v59 }
 0x14a   : > { %v1218_v17 = vpop.permute.xlu0 %1217  ;;  %v1223_v28 = vpop.permute.xlu1 %1222 }
 0x14b   : > { %2234 = vmatmul.mubr.msk.f32.vlgmr.msra.gmra.mrb[16].mxu0 %vm708_vm5, %v2973_v61  ;;  %2266 = vmatmul.mubr.msk.f32.vlgmr.msra.gmra.mrb[16].mxu1 %vm708_vm5, %v2987_v14  ;;  %v1241_v61 = vsel %vm564_vm1, %v3000_v0, %v1216_v25  ;;  %v1242_v62 = vsel %vm564_vm1, %v3052_v58, %v1218_v17 }
 0x14c   : > { %2236 = vmatprep.mubr.msk.f32.mxu0 %vm708_vm5, %v3028_v45  ;;  %2268 = vmatprep.mubr.msk.f32.mxu1 %vm708_vm5, %v3031_v48  ;;  %v1243_v45 = vsel %vm589_vm2, %v1240_v47, %v1223_v28 }
 0x14e   : > { %v1225_v22 = vpop.permute.xlu0 %1224  ;;  %v1227_v52 = vpop.permute.xlu1 %1226 }
 0x14f   : > { %2237 = vmatmul.mubr.msk.f32.gmra.mrb[18].mxu0 %vm708_vm5, %v3041_v54  ;;  %2269 = vmatmul.mubr.msk.f32.gmra.mrb[18].mxu1 %vm708_vm5, %v3061_v12  ;;  %v1244_v54 = vsel %vm589_vm2, %v1241_v61, %v1225_v22 }
 0x150   : > { %2239 = vmatprep.mubr.msk.f32.mxu0 %vm708_vm5, %v3087_v36  ;;  %2271 = vmatprep.mubr.msk.f32.mxu1 %vm708_vm5, %v3090_v35  ;;  %v1245_v36 = vsel %vm589_vm2, %v1242_v62, %v1227_v52 }
 0x152   : > { %v1232_v46 = vpop.permute.xlu0 %1231  ;;  %v1234_v14 = vpop.permute.xlu1 %1233 }
 0x153   : > { %2240 = vmatmul.mubr.msk.f32.gmra.mrb[20].mxu0 %vm708_vm5, %v3101_v21  ;;  %2272 = vmatmul.mubr.msk.f32.gmra.mrb[20].mxu1 %vm708_vm5, %v3107_v55  ;;  %v1246_v0 = vsel %vm614_vm3, %v1243_v45, %v1232_v46  ;;  %v1247_v35 = vsel %vm614_vm3, %v1244_v54, %v1234_v14 }
 0x154   : > { %2242 = vmatprep.mubr.msk.f32.mxu0 %vm708_vm5, %v3123_v19  ;;  %2274 = vmatprep.mubr.msk.f32.mxu1 %vm708_vm5, %v3126_v30  ;;  %v1424_v30 = vrot.slane %v1246_v0, 2 }
 0x156   : > { %v1415_v48 = vpop.permute.xlu0 %1414  ;;  %v1236_v21 = vpop.permute.xlu1 %1235 }
 0x157   : > { %2243 = vmatmul.mubr.msk.f32.gmra.mrb[22].mxu0 %vm708_vm5, %v3134_v32  ;;  %2275 = vmatmul.mubr.msk.f32.gmra.mrb[22].mxu1 %vm708_vm5, %v3143_v40  ;;  %v1420_v12 = vsel %vm564_vm1, %v3052_v58, %v1415_v48  ;;  %v1252_v58 = vrot.slane %v1246_v0, 1  ;;  %v1253_v32 = vrot.slane %v1247_v35, 1  ;;  %v1425_v40 = vrot.slane %v1247_v35, 2 }
 0x158   : > { %2245 = vmatprep.mubr.msk.f32.mxu0 %vm708_vm5, %v3159_v60  ;;  %2277 = vmatprep.mubr.msk.f32.mxu1 %vm708_vm5, %v3162_v26  ;;  %v1421_v55 = vsel %vm589_vm2, %v1420_v12, %v1227_v52  ;;  %v1248_v60 = vsel %vm614_vm3, %v1245_v36, %v1236_v21 }
 0x15a   : > { %v1418_v19 = vpop.permute.xlu0 %1417 }
 0x15b   : > { %2246 = vmatmul.mubr.msk.f32.gmra.mrb[24].mxu0 %vm708_vm5, %v3173_v63  ;;  %2278 = vmatmul.mubr.msk.f32.gmra.mrb[24].mxu1 %vm708_vm5, %v3179_v23  ;;  %v1422_v26 = vsel %vm614_vm3, %v1421_v55, %v1418_v19  ;;  %v1255_v63 = vrot.slane %v1248_v60, 1 }
 0x15c   : > { %2248 = vmatprep.mubr.msk.f32.mxu0 %vm708_vm5, %v3195_v4  ;;  %2280 = vmatprep.mubr.msk.f32.mxu1 %vm708_vm5, %v3198_v7  ;;  %v1427_v23 = vrot.slane %v1422_v26, 2  ;;  %v1254_v4 = vsel %vm663_vm4, %v1252_v58, %v1253_v32  ;;  %v1426_v7 = vsel %vm985_vm6, %v1424_v30, %v1425_v40 }
 0x15e   : > { %v1428_v29 = vsel %vm985_vm6, %v1425_v40, %v1427_v23 }
 0x15f   : > { %2249 = vmatmul.mubr.msk.f32.gmra.mrb[26].mxu0 %vm708_vm5, %v3206_v24  ;;  %2281 = vmatmul.mubr.msk.f32.gmra.mrb[26].mxu1 %vm708_vm5, %v3215_v31  ;;  %v1256_v24 = vsel %vm663_vm4, %v1253_v32, %v1255_v63 }
 0x160   : > { %2251 = vmatprep.mubr.msk.f32.mxu0 %vm708_vm5, %v3234_v8  ;;  %2283 = vmatprep.mubr.msk.f32.mxu1 %vm708_vm5, %v3237_v15 }
 0x163   : > { %2252 = vmatmul.mubr.msk.f32.gmra.mrb[28].mxu0 %vm708_vm5, %v703_v6  ;;  %2284 = vmatmul.mubr.msk.f32.gmra.mrb[28].mxu1 %vm708_vm5, %v1025_v9 }
 0x164   : > { %2254 = vmatprep.mubr.msk.f32.mxu0 %vm708_vm5, %v1254_v4  ;;  %2286 = vmatprep.mubr.msk.f32.mxu1 %vm708_vm5, %v1426_v7 }
 0x167   : > { %2255 = vmatmul.mubr.msk.f32.gmra.mrb[30].mxu0 %vm708_vm5, %v1256_v24  ;;  %2287 = vmatmul.mubr.msk.f32.gmra.mrb[30].mxu1 %vm708_vm5, %v1428_v29 }
 0x17e   : > { %v3327_v53 = vpop.f32.mrb[0].mxu0 }
 0x17f   : > { %v3329_v10 = vpop.f32.mrb[1].mxu0 }
 0x186   : > { %v2203_v31 = vpop.f32.mrb[0].mxu1 }
 0x187   : > { %1601 = vrot.lane.b32.xlu0 %v2203_v31, %s2501_s21  ;;  %v1129_v3 = vpop.f32.mrb[1].mxu1 }
 0x188   : > { %1599 = vrot.lane.b32.xlu1 %v1129_v3, %s2501_s21 }
 0x196   : > { %v3333_v1 = vpop.f32.mrb[2].mxu0 }
 0x197   : > { %v3335_v43 = vpop.f32.mrb[3].mxu0 }
 0x19a   : > { %v2206_v27 = vpop.f32.mrb[2].mxu1 }
 0x19b   : > { %1605 = vrot.lane.b32.xlu0 %v2206_v27, %s2501_s21  ;;  %v1139_v44 = vpop.f32.mrb[3].mxu1 }
 0x19c   : > { %1603 = vrot.lane.b32.xlu1 %v1139_v44, %s2501_s21 }
 0x1aa   : > { %v3339_v34 = vpop.f32.mrb[4].mxu0 }
 0x1ab   : > { %v3341_v20 = vpop.f32.mrb[5].mxu0 }
 0x1b2   : > { %v2209_v37 = vpop.f32.mrb[4].mxu1 }
 0x1b3   : > { %1609 = vrot.lane.b32.xlu0 %v2209_v37, %s2501_s21  ;;  %v1149_v38 = vpop.f32.mrb[5].mxu1 }
 0x1b4   : > { %1607 = vrot.lane.b32.xlu1 %v1149_v38, %s2501_s21 }
 0x1c2   : > { %v3345_v11 = vpop.f32.mrb[6].mxu0 }
 0x1c3   : > { %v3347_v39 = vpop.f32.mrb[7].mxu0 }
 0x1c6   : > { %v2212_v42 = vpop.f32.mrb[6].mxu1 }
 0x1c7   : > { %1613 = vrot.lane.b32.xlu0 %v2212_v42, %s2501_s21  ;;  %v1159_v57 = vpop.f32.mrb[7].mxu1 }
 0x1c8   : > { %1611 = vrot.lane.b32.xlu1 %v1159_v57, %s2501_s21 }
 0x1d6   : > { %v3351_v18 = vpop.f32.mrb[8].mxu0 }
 0x1d7   : > { %v3353_v5 = vpop.f32.mrb[9].mxu0 }
 0x1de   : > { %v2215_v49 = vpop.f32.mrb[8].mxu1 }
 0x1df   : > { %1617 = vrot.lane.b32.xlu0 %v2215_v49, %s2501_s21  ;;  %v1169_v16 = vpop.f32.mrb[9].mxu1 }
 0x1e0   : > { %1615 = vrot.lane.b32.xlu1 %v1169_v16, %s2501_s21 }
 0x1ee   : > { %v3357_v50 = vpop.f32.mrb[10].mxu0 }
 0x1ef   : > { %v3359_v51 = vpop.f32.mrb[11].mxu0 }
 0x1f2   : > { %v2218_v33 = vpop.f32.mrb[10].mxu1 }
 0x1f3   : > { %1621 = vrot.lane.b32.xlu0 %v2218_v33, %s2501_s21  ;;  %v1179_v8 = vpop.f32.mrb[11].mxu1 }
 0x1f4   : > { %1619 = vrot.lane.b32.xlu1 %v1179_v8, %s2501_s21 }
 0x1f9   : > { %v1602_v31 = vpop.permute.xlu0 %1601 }
 0x1fa   : > { %v1600_v3 = vpop.permute.xlu1 %1599 }
 0x202   : > { %v3363_v15 = vpop.f32.mrb[12].mxu0 }
 0x203   : > { %v3365_v13 = vpop.f32.mrb[13].mxu0 }
 0x20a   : > { %v2221_v56 = vpop.f32.mrb[12].mxu1 }
 0x20b   : > { %1625 = vrot.lane.b32.xlu0 %v2221_v56, %s2501_s21  ;;  %v1189_v2 = vpop.f32.mrb[13].mxu1 }
 0x20c   : > { %1623 = vrot.lane.b32.xlu1 %v1189_v2, %s2501_s21 }
 0x20d   : > { %v1606_v27 = vpop.permute.xlu0 %1605 }
 0x20e   : > { %v1604_v44 = vpop.permute.xlu1 %1603 }
 0x21a   : > { %v3369_v41 = vpop.f32.mrb[14].mxu0  ;;  %v2224_v6 = vpop.f32.mrb[14].mxu1 }
 0x21b   : > { %1629 = vrot.lane.b32.xlu0 %v2224_v6, %s2501_s21  ;;  %v3372_v9 = vpop.f32.mrb[15].mxu0  ;;  %v1199_v59 = vpop.f32.mrb[15].mxu1 }
 0x21c   : > { %1627 = vrot.lane.b32.xlu1 %v1199_v59, %s2501_s21  ;;  %s2503_s21 = smov [#allocation2]  }
 0x21e   : > { %v2235_v25 = vpop.f32.mrb[16].mxu0  ;;  %v2267_v17 = vpop.f32.mrb[16].mxu1 }
 0x21f   : > { %v1504_v28 = vpop.f32.mrb[17].mxu1  ;;  %1665 = vrot.lane.b32.xlu0 %v2235_v25, %s2500_s27  ;;  %v1332_v22 = vpop.f32.mrb[17].mxu0 }
 0x220   : > { %1663 = vrot.lane.b32.xlu1 %v1332_v22, %s2500_s27  ;;  %v3431_v22 = vld [vmem:[%s3621_s3] ss:$0 sm:$0xff] }
 0x222   : > { %v2238_v52 = vpop.f32.mrb[18].mxu0  ;;  %v2270_v46 = vpop.f32.mrb[18].mxu1 }
 0x223   : > { %v1514_v47 = vpop.f32.mrb[19].mxu1  ;;  %1729 = vrot.lane.b32.xlu0 %v2267_v17, %s2502_s10  ;;  %v1342_v61 = vpop.f32.mrb[19].mxu0 }
 0x224   : > { %1727 = vrot.lane.b32.xlu1 %v1504_v28, %s2502_s10  ;;  %v1777_v28 = vsel %vm1775_vm7, %v3327_v53, %v1602_v31 }
 0x225   : > { %v1610_v37 = vpop.permute.xlu0 %1609 }
 0x226   : > { %v2241_v14 = vpop.f32.mrb[20].mxu0  ;;  %v2273_v45 = vpop.f32.mrb[20].mxu1 }
 0x227   : > { %1669 = vrot.lane.b32.xlu0 %v2238_v52, %s2500_s27  ;;  %v1352_v48 = vpop.f32.mrb[21].mxu0  ;;  %v1524_v62 = vpop.f32.mrb[21].mxu1  ;;  %v1776_v52 = vsel %vm1775_vm7, %v3329_v10, %v1600_v3 }
 0x228   : > { %1667 = vrot.lane.b32.xlu1 %v1342_v61, %s2500_s27  ;;  %v1608_v38 = vpop.permute.xlu1 %1607 }
 0x22a   : > { %v2244_v54 = vpop.f32.mrb[22].mxu0  ;;  %v2276_v12 = vpop.f32.mrb[22].mxu1 }
 0x22b   : > { %v1534_v0 = vpop.f32.mrb[23].mxu1  ;;  %1733 = vrot.lane.b32.xlu0 %v2270_v46, %s2502_s10  ;;  %v1362_v36 = vpop.f32.mrb[23].mxu0 }
 0x22c   : > { %1731 = vrot.lane.b32.xlu1 %v1514_v47, %s2502_s10 }
 0x22e   : > { %v2247_v35 = vpop.f32.mrb[24].mxu0  ;;  %v2279_v21 = vpop.f32.mrb[24].mxu1 }
 0x22f   : > { %v1544_v55 = vpop.f32.mrb[25].mxu1  ;;  %1673 = vrot.lane.b32.xlu0 %v2241_v14, %s2500_s27  ;;  %v1372_v19 = vpop.f32.mrb[25].mxu0 }
 0x230   : > { %1671 = vrot.lane.b32.xlu1 %v1352_v48, %s2500_s27 }
 0x232   : > { %v2250_v58 = vpop.f32.mrb[26].mxu0  ;;  %v2282_v30 = vpop.f32.mrb[26].mxu1 }
 0x233   : > { %v1554_v32 = vpop.f32.mrb[27].mxu1  ;;  %1737 = vrot.lane.b32.xlu0 %v2273_v45, %s2502_s10  ;;  %v1382_v40 = vpop.f32.mrb[27].mxu0 }
 0x234   : > { %1735 = vrot.lane.b32.xlu1 %v1524_v62, %s2502_s10 }
 0x236   : > { %v2253_v60 = vpop.f32.mrb[28].mxu0  ;;  %v2285_v26 = vpop.f32.mrb[28].mxu1 }
 0x237   : > { %v1564_v63 = vpop.f32.mrb[29].mxu1  ;;  %1677 = vrot.lane.b32.xlu0 %v2244_v54, %s2500_s27  ;;  %v1392_v23 = vpop.f32.mrb[29].mxu0 }
 0x238   : > { %1675 = vrot.lane.b32.xlu1 %v1362_v36, %s2500_s27 }
 0x239   : > { %v1614_v42 = vpop.permute.xlu0 %1613 }
 0x23a   : > { %v2256_v4 = vpop.f32.mrb[30].mxu0  ;;  %v2288_v7 = vpop.f32.mrb[30].mxu1  ;;  %v1783_v3 = vsel %vm1775_vm7, %v3345_v11, %v1614_v42 }
 0x23b   : > { %1741 = vrot.lane.b32.xlu0 %v2276_v12, %s2502_s10  ;;  %v1402_v24 = vpop.f32.mrb[31].mxu0  ;;  %v1574_v29 = vpop.f32.mrb[31].mxu1  ;;  %v1779_v12 = vsel %vm1775_vm7, %v3333_v1, %v1606_v27 }
 0x23c   : > { %1739 = vrot.lane.b32.xlu1 %v1534_v0, %s2502_s10  ;;  %v1612_v57 = vpop.permute.xlu1 %1611  ;;  %v1778_v0 = vsel %vm1775_vm7, %v3335_v43, %v1604_v44 }
 0x23d   : > { %v1782_v27 = vsel %vm1775_vm7, %v3347_v39, %v1612_v57 }
 0x23f   : > { %1681 = vrot.lane.b32.xlu0 %v2247_v35, %s2500_s27 }
 0x240   : > { %1679 = vrot.lane.b32.xlu1 %v1372_v19, %s2500_s27 }
 0x243   : > { %1745 = vrot.lane.b32.xlu0 %v2279_v21, %s2502_s10 }
 0x244   : > { %1743 = vrot.lane.b32.xlu1 %v1544_v55, %s2502_s10 }
 0x247   : > { %1685 = vrot.lane.b32.xlu0 %v2250_v58, %s2500_s27 }
 0x248   : > { %1683 = vrot.lane.b32.xlu1 %v1382_v40, %s2500_s27  ;;  %v1781_v40 = vsel %vm1775_vm7, %v3339_v34, %v1610_v37 }
 0x24b   : > { %1749 = vrot.lane.b32.xlu0 %v2282_v30, %s2502_s10 }
 0x24c   : > { %1747 = vrot.lane.b32.xlu1 %v1554_v32, %s2502_s10 }
 0x24f   : > { %1689 = vrot.lane.b32.xlu0 %v2253_v60, %s2500_s27  ;;  %v1780_v60 = vsel %vm1775_vm7, %v3341_v20, %v1608_v38 }
 0x250   : > { %1687 = vrot.lane.b32.xlu1 %v1392_v23, %s2500_s27 }
 0x251   : > { %v3407_v49 = vpop.permute.xlu0 %1617 }
 0x252   : > { %v3409_v16 = vpop.permute.xlu1 %1615  ;;  %v1785_v42 = vsel %vm1775_vm7, %v3351_v18, %v3407_v49 }
 0x253   : > { %1753 = vrot.lane.b32.xlu0 %v2285_v26, %s2502_s10  ;;  %v1784_v57 = vsel %vm1775_vm7, %v3353_v5, %v3409_v16 }
 0x254   : > { %1751 = vrot.lane.b32.xlu1 %v1564_v63, %s2502_s10 }
 0x257   : > { %1693 = vrot.lane.b32.xlu0 %v2256_v4, %s2500_s27 }
 0x258   : > { %1691 = vrot.lane.b32.xlu1 %v1402_v24, %s2500_s27 }
 0x25b   : > { %1757 = vrot.lane.b32.xlu0 %v2288_v7, %s2502_s10 }
 0x25c   : > { %1755 = vrot.lane.b32.xlu1 %v1574_v29, %s2502_s10  ;;  %s2406_s10 = sshll.u32 %s2503_s21, 4  ;;  %s2407_s10 = int_to_ptr.vmem [resolvable:$false] %s2406_s10 }
 0x25d   : > { %s2408_s24 = scalar_lea.vmem %s2407_s10, 4096  ;;  %p2409_p5 = scmp.lt.s32.totalorder %s3557_s19, %s2407_s10 }
 0x25e   : > { %p2410_p6 = scmp.lt.s32.totalorder %s2408_s24, %s2402_s5 }
 0x260   : > { %p2411_p7 = por %p2410_p6, %p2409_p5 }
 0x262   : > { %p2412_p9 = pnand %p2411_p7, %p2405_p4 }
 0x265   : > { %v3411_v33 = vpop.permute.xlu0 %1621 }
 0x266   : > { %v3413_v8 = vpop.permute.xlu1 %1619  ;;  %v1787_v49 = vsel %vm1775_vm7, %v3357_v50, %v3411_v33 }
 0x267   : > { %v1786_v16 = vsel %vm1775_vm7, %v3359_v51, %v3413_v8 }
 0x27d   : > { %v3415_v56 = vpop.permute.xlu0 %1625 }
 0x27e   : > { %v3417_v2 = vpop.permute.xlu1 %1623  ;;  %v1789_v8 = vsel %vm1775_vm7, %v3363_v15, %v3415_v56 }
 0x28d   : > { %v3419_v6 = vpop.permute.xlu0 %1629 }
 0x28e   : > { %v3421_v59 = vpop.permute.xlu1 %1627 }
 0x291   : > { %v1666_v25 = vpop.permute.xlu0 %1665 }
 0x292   : > { %v1664_v17 = vpop.permute.xlu1 %1663  ;;  %v1793_v46 = vsel %vm564_vm1, %v1777_v28, %v1666_v25 }
 0x293   : > { %v1792_v61 = vsel %vm564_vm1, %v1776_v52, %v1664_v17 }
 0x295   : > { %v1730_v47 = vpop.permute.xlu0 %1729 }
 0x296   : > { %v1810_v14 = vsel %vm1808_vm8, %v1793_v46, %v1730_v47  ;;  %v1728_v45 = vpop.permute.xlu1 %1727 }
 0x297   : > { %v1833_v48 = vadd.f32 %v3431_v22, %v1810_v14  ;;  %v1809_v53 = vsel %vm1808_vm8, %v1792_v61, %v1728_v45 }
 0x298   : > { %v1832_v62 = vadd.f32 %v3431_v22, %v1809_v53 }
 0x299   : > { %1849 = vst.msk [vmem:[%s3441_s11 + $0x8] sm:$0xff] %vm589_vm2, %v1833_v48  ;;  %v1670_v10 = vpop.permute.xlu0 %1669 }
 0x29a   : > { %1848 = vst.msk [vmem:[%s3441_s11] sm:$0xff] %vm589_vm2, %v1832_v62  ;;  %v1668_v54 = vpop.permute.xlu1 %1667  ;;  %v1795_v36 = vsel %vm564_vm1, %v1779_v12, %v1670_v10 }
 0x29b   : > { %v1794_v21 = vsel %vm564_vm1, %v1778_v0, %v1668_v54 }
 0x29d   : > { %v1734_v35 = vpop.permute.xlu0 %1733 }
 0x29e   : > { %v1812_v55 = vsel %vm1808_vm8, %v1795_v36, %v1734_v35  ;;  %v1732_v19 = vpop.permute.xlu1 %1731 }
 0x29f   : > { %v1835_v58 = vadd.f32 %v3431_v22, %v1812_v55  ;;  %v1811_v30 = vsel %vm1808_vm8, %v1794_v21, %v1732_v19  ;;  %v1788_v19 = vsel %vm1775_vm7, %v3365_v13, %v3417_v2  ;;  %v1791_v2 = vsel %vm1775_vm7, %v3369_v41, %v3419_v6 }
 0x2a0   : > { %v1834_v32 = vadd.f32 %v3431_v22, %v1811_v30 }
 0x2a1   : > { %1851 = vst.msk [vmem:[%s3441_s11 + $0x18] sm:$0xff] %vm589_vm2, %v1835_v58  ;;  %v1674_v1 = vpop.permute.xlu0 %1673 }
 0x2a2   : > { %1850 = vst.msk [vmem:[%s3441_s11 + $0x10] sm:$0xff] %vm589_vm2, %v1834_v32  ;;  %v1672_v43 = vpop.permute.xlu1 %1671  ;;  %v1797_v26 = vsel %vm564_vm1, %v1781_v40, %v1674_v1 }
 0x2a3   : > { %v1796_v23 = vsel %vm564_vm1, %v1780_v60, %v1672_v43 }
 0x2a5   : > { %v1738_v63 = vpop.permute.xlu0 %1737 }
 0x2a6   : > { %v1814_v4 = vsel %vm1808_vm8, %v1797_v26, %v1738_v63  ;;  %v1736_v7 = vpop.permute.xlu1 %1735  ;;  %v1790_v26 = vsel %vm1775_vm7, %v3372_v9, %v3421_v59 }
 0x2a7   : > { %v1837_v24 = vadd.f32 %v3431_v22, %v1814_v4  ;;  %v1813_v29 = vsel %vm1808_vm8, %v1796_v23, %v1736_v7 }
 0x2a8   : > { %v1836_v31 = vadd.f32 %v3431_v22, %v1813_v29 }
 0x2a9   : > { %1853 = vst.msk [vmem:[%s3441_s11 + $0x28] sm:$0xff] %vm589_vm2, %v1837_v24  ;;  %v1678_v34 = vpop.permute.xlu0 %1677 }
 0x2aa   : > { %1852 = vst.msk [vmem:[%s3441_s11 + $0x20] sm:$0xff] %vm589_vm2, %v1836_v31  ;;  %v1676_v20 = vpop.permute.xlu1 %1675  ;;  %v1799_v44 = vsel %vm564_vm1, %v1783_v3, %v1678_v34 }
 0x2ab   : > { %v1798_v38 = vsel %vm564_vm1, %v1782_v27, %v1676_v20 }
 0x2ad   : > { %v1742_v37 = vpop.permute.xlu0 %1741 }
 0x2ae   : > { %v1816_v25 = vsel %vm1808_vm8, %v1799_v44, %v1742_v37  ;;  %v1740_v17 = vpop.permute.xlu1 %1739 }
 0x2af   : > { %v1839_v28 = vadd.f32 %v3431_v22, %v1816_v25  ;;  %v1815_v52 = vsel %vm1808_vm8, %v1798_v38, %v1740_v17 }
 0x2b0   : > { %v1838_v46 = vadd.f32 %v3431_v22, %v1815_v52 }
 0x2b1   : > { %1855 = vst.msk [vmem:[%s3441_s11 + $0x38] sm:$0xff] %vm589_vm2, %v1839_v28  ;;  %v1682_v11 = vpop.permute.xlu0 %1681 }
 0x2b2   : > { %1854 = vst.msk [vmem:[%s3441_s11 + $0x30] sm:$0xff] %vm589_vm2, %v1838_v46  ;;  %v1680_v39 = vpop.permute.xlu1 %1679  ;;  %v1801_v47 = vsel %vm564_vm1, %v1785_v42, %v1682_v11 }
 0x2b3   : > { %v1800_v14 = vsel %vm564_vm1, %v1784_v57, %v1680_v39 }
 0x2b5   : > { %v1746_v61 = vpop.permute.xlu0 %1745 }
 0x2b6   : > { %v1818_v45 = vsel %vm1808_vm8, %v1801_v47, %v1746_v61  ;;  %v1744_v48 = vpop.permute.xlu1 %1743 }
 0x2b7   : > { %v1841_v53 = vadd.f32 %v3431_v22, %v1818_v45  ;;  %v1817_v62 = vsel %vm1808_vm8, %v1800_v14, %v1744_v48 }
 0x2b8   : > { %v1840_v10 = vadd.f32 %v3431_v22, %v1817_v62 }
 0x2b9   : > { %1857 = vst.msk [vmem:[%s3441_s11 + $0x48] sm:$0xff] %vm589_vm2, %v1841_v53  ;;  %v1686_v18 = vpop.permute.xlu0 %1685 }
 0x2ba   : > { %1856 = vst.msk [vmem:[%s3441_s11 + $0x40] sm:$0xff] %vm589_vm2, %v1840_v10  ;;  %v1684_v5 = vpop.permute.xlu1 %1683  ;;  %v1803_v54 = vsel %vm564_vm1, %v1787_v49, %v1686_v18 }
 0x2bb   : > { %v1802_v0 = vsel %vm564_vm1, %v1786_v16, %v1684_v5 }
 0x2bd   : > { %v1750_v12 = vpop.permute.xlu0 %1749 }
 0x2be   : > { %v1820_v36 = vsel %vm1808_vm8, %v1803_v54, %v1750_v12  ;;  %v1748_v35 = vpop.permute.xlu1 %1747 }
 0x2bf   : > { %v1843_v21 = vadd.f32 %v3431_v22, %v1820_v36  ;;  %v1819_v55 = vsel %vm1808_vm8, %v1802_v0, %v1748_v35 }
 0x2c0   : > { %v1842_v50 = vadd.f32 %v3431_v22, %v1819_v55 }
 0x2c1   : > { %1859 = vst.msk [vmem:[%s3441_s11 + $0x58] sm:$0xff] %vm589_vm2, %v1843_v21  ;;  %v1690_v51 = vpop.permute.xlu0 %1689 }
 0x2c2   : > { %1858 = vst.msk [vmem:[%s3441_s11 + $0x50] sm:$0xff] %vm589_vm2, %v1842_v50  ;;  %v1688_v33 = vpop.permute.xlu1 %1687  ;;  %v1805_v58 = vsel %vm564_vm1, %v1789_v8, %v1690_v51 }
 0x2c3   : > { %v1804_v32 = vsel %vm564_vm1, %v1788_v19, %v1688_v33 }
 0x2c5   : > { %v1754_v30 = vpop.permute.xlu0 %1753 }
 0x2c6   : > { %v1822_v1 = vsel %vm1808_vm8, %v1805_v58, %v1754_v30  ;;  %v1752_v43 = vpop.permute.xlu1 %1751 }
 0x2c7   : > { %v1845_v40 = vadd.f32 %v3431_v22, %v1822_v1  ;;  %v1821_v60 = vsel %vm1808_vm8, %v1804_v32, %v1752_v43 }
 0x2c8   : > { %v1844_v15 = vadd.f32 %v3431_v22, %v1821_v60 }
 0x2c9   : > { %1861 = vst.msk [vmem:[%s3441_s11 + $0x68] sm:$0xff] %vm589_vm2, %v1845_v40  ;;  %v1694_v13 = vpop.permute.xlu0 %1693 }
 0x2ca   : > { %1860 = vst.msk [vmem:[%s3441_s11 + $0x60] sm:$0xff] %vm589_vm2, %v1844_v15  ;;  %v1692_v56 = vpop.permute.xlu1 %1691  ;;  %v1807_v63 = vsel %vm564_vm1, %v1791_v2, %v1694_v13 }
 0x2cb   : > { %v1806_v4 = vsel %vm564_vm1, %v1790_v26, %v1692_v56 }
 0x2cd   : > { %v1758_v23 = vpop.permute.xlu0 %1757 }
 0x2ce   : > { %v1824_v7 = vsel %vm1808_vm8, %v1807_v63, %v1758_v23  ;;  %v1756_v24 = vpop.permute.xlu1 %1755 }
 0x2cf   : > { %v1847_v29 = vadd.f32 %v3431_v22, %v1824_v7  ;;  %v1823_v41 = vsel %vm1808_vm8, %v1806_v4, %v1756_v24 }
 0x2d0   : > { %v1846_v9 = vadd.f32 %v3431_v22, %v1823_v41 }
 0x2d1   : > { %1863 = vst.msk [vmem:[%s3441_s11 + $0x78] sm:$0xff] %vm589_vm2, %v1847_v29 }
 0x2d2   : > { %1862 = vst.msk [vmem:[%s3441_s11 + $0x70] sm:$0xff] %vm589_vm2, %v1846_v9 }
 0x2d3   : > { %2415 = shalt.err (!%p2412_p9)
}
 0x2d4   : > { %s2416_s14 = scalar_lea.hbm %s3554_s23, 2048  ;;  %s2420_s11 = scalar_lea.hbm %s3622_s4, 8192 }
 0x2d5   : > { %p2417_p10 = scmp.ne.s32.totalorder %s3554_s23, %s2416_s14  ;;  %p2421_p13 = scmp.lt.u32.totalorder %s3554_s23, %s3622_s4 }
 0x2d6   : > { %p2422_p0 = scmp.lt.u32.totalorder %s2420_s11, %s2416_s14  ;;  %p2424_p2 = scmp.lt.u32.totalorder %s2416_s14, %s3554_s23 }
 0x2d7   : > { %p2418_p11 = pnand %p2417_p10, %p2581_p3 }
 0x2d8   : > { %p2423_p1 = por %p2422_p0, %p2421_p13 }
 0x2d9   : > { %p2419_p12 = pneg %p2418_p11 }
 0x2da   : > { %p2425_p4 = por %p2424_p2, %p2423_p1 }
 0x2dc   : > { %p2426_p5 = pnand %p2425_p4, %p2419_p12 }
 0x2de   : > { %2429 = shalt.err (!%p2426_p5)
}
 0x2df   : > { %s2504_s25 = smov 128  }
 0x2e0   : > { %2325 = dma.vmem_to_hbm [thread:$0]  (%p2581_p3), %s3557_s19, 2048, %s3554_s23, %s3565_s30, %s2504_s25, %s2504_s25, %s2500_s27  }
 0x2e1 PF: > { %p2331_p6 = scmp.ge.s32.totalorder %s2496_s22, 2  ;;  %s1896_s18 = sand.u32 1, %s2468_s15  }
 0x2e2   : > { %s1897_s26 = scalar_lea.sflag [#allocation3], %s1896_s18 }
 0x2e3   : > { %p2328_p7 = pnand %p2331_p6, %p2590_p8 }
 0x2e5   : > { %2463 = dma.done.wait (!%p2328_p7), %s1897_s26, 2048  }
 0x2e6   : > { %2465 = vsyncadd (!%p2328_p7), %s1897_s26, 4294965248  ;;  %s17_s22 = sadd.s32 1, %s2496_s22   ;;  %s3631_s19 = sld [smem:[#allocation5_spill]] }
 0x2e7   : > { %p14_p9 = scmp.ge.s32.totalorder %s17_s22, 6   ;;  %s3632_s28 = sld [smem:[#allocation6_spill]] }
 0x2e8   : > { %s3633_s21 = sld [smem:[#allocation7_spill]]  ;;  %s3634_s15 = smov %s2472_s16 }
 0x2e9   : > { %s3635_s16 = smov %s2476_s17  ;;  %s3636_s17 = smov %s2599_s7 }
 0x2ea   : > { %s3637_s18 = smov %s2488_s20  ;;  %16 = sbr.rel (!%p14_p9) target bundleno = 5 (0x5), region = 77 }
 0x2ed   : > { %s3638_s20 = smov %s3632_s28 }
 0x2f1   :  { %1902 = vsyncpa [#allocation3], 1 }
 0x2f2   :  { %1904 = vsyncpa [#allocation3 + $0x1], 1 }

</bundles_post_ra>
